<compile_context>
chip_gen: v5e
topology: v5e:2x2
jax: 0.10.0
libtpu: 0.0.40
codegen_flags: <defaults>
</compile_context>

<pallas_src>
import functools

import jax
import jax.numpy as jnp
from jax.experimental import pallas as pl
from jax.experimental.pallas import tpu as pltpu


def _spatial_attention_kernel(x_ref, w_ref, o_ref, pad_a, pad_b, *, C, H, W, K, P):
    # ---- one-time init of the padded scratch (border ring stays zero) ------
    @pl.when(pl.program_id(0) == 0)
    def _():
        pad_a[...] = jnp.zeros_like(pad_a)
        pad_b[...] = jnp.zeros_like(pad_b)

    # ---- channel mean / max (elementwise over leading channel axis) --------
    acc = x_ref[0, 0].astype(jnp.float32)          # (H, W)
    mx = acc
    for c in range(1, C):
        xc = x_ref[0, c].astype(jnp.float32)
        acc = acc + xc
        mx = jnp.maximum(mx, xc)
    avg = acc * (1.0 / C)

    # ---- write interiors of the zero-padded maps ----------------------------
    pad_a[P:P + H, P:P + W] = avg
    pad_b[P:P + H, P:P + W] = mx

    # ---- KxK conv (2 -> 1 channels) as shifted MACs; weights from SMEM ------
    out = jnp.zeros((H, W), jnp.float32)
    for ky in range(K):
        for kx in range(K):
            wa = w_ref[0 * K * K + ky * K + kx]    # scalar (SMEM)
            wb = w_ref[1 * K * K + ky * K + kx]
            out = out + wa * pad_a[ky:ky + H, kx:kx + W]
            out = out + wb * pad_b[ky:ky + H, kx:kx + W]

    # ---- sigmoid + store (lane axis = W, no in-kernel reshape) --------------
    o_ref[0] = jax.nn.sigmoid(out).astype(o_ref.dtype)


def spatial_attention_pallas(x_nchw, w_oihw, *, kernel_size=7):
    """x_nchw: (N, C, H, W); w_oihw: (1, 2, K, K) — PyTorch Conv2d weight layout."""
    N, C, H, W = x_nchw.shape
    K = kernel_size
    assert K in (3, 7), "kernel size must be 3 or 7"
    P = 3 if K == 7 else 1
    assert w_oihw.shape == (1, 2, K, K)

    # Flatten the conv weight to a 1-D scalar table in (c, ky, kx) order; it is
    # placed whole in SMEM (no blocking, no per-step indexing of a 4-D ref).
    w_flat = jnp.asarray(w_oihw, jnp.float32)[0].reshape(2 * K * K)

    kernel = functools.partial(_spatial_attention_kernel,
                               C=C, H=H, W=W, K=K, P=P)

    # Explicit VMEM budget: double-buffered input + output blocks + pad scratch.
    itemsize = jnp.dtype(x_nchw.dtype).itemsize
    pad_bytes = 2 * (H + 2 * P) * (W + 2 * P) * 4
    vmem_bytes = 2 * C * H * W * itemsize + 2 * H * W * itemsize + pad_bytes
    vmem_bytes = int(min(max(vmem_bytes + (1 << 20), 8 << 20), 64 << 20))

    out = pl.pallas_call(
        kernel,
        out_shape=jax.ShapeDtypeStruct((N, H, W), x_nchw.dtype),
        grid_spec=pltpu.PrefetchScalarGridSpec(
            num_scalar_prefetch=0,
            grid=(N,),                                    # one image per step
            in_specs=[
                pl.BlockSpec((1, C, H, W), lambda n: (n, 0, 0, 0)),
                pl.BlockSpec(memory_space=pltpu.MemorySpace.SMEM),   # weights
            ],
            out_specs=pl.BlockSpec((1, H, W), lambda n: (n, 0, 0)),
            scratch_shapes=[
                pltpu.VMEM((H + 2 * P, W + 2 * P), jnp.float32),  # padded avg
                pltpu.VMEM((H + 2 * P, W + 2 * P), jnp.float32),  # padded max
            ],
        ),
        compiler_params=pltpu.CompilerParams(
            # "arbitrary": later grid steps rely on the scratch border zeroed
            # at step 0 (scratch persists across the sequential grid loop).
            dimension_semantics=("arbitrary",),
            vmem_limit_bytes=vmem_bytes,
        ),
    )(x_nchw, w_flat)

    # Restore the PyTorch (N, 1, H, W) shape — free metadata reshape in XLA.
    return out.reshape(N, 1, H, W)


# ----------------------------- pure-JAX reference ---------------------------
def spatial_attention_ref(x_nchw, w_oihw, *, kernel_size=7):
    P = 3 if kernel_size == 7 else 1
    x = x_nchw.astype(jnp.float32)
    avg = jnp.mean(x, axis=1, keepdims=True)
    mx = jnp.max(x, axis=1, keepdims=True)
    cat = jnp.concatenate([avg, mx], axis=1)            # (N, 2, H, W)
    y = jax.lax.conv_general_dilated(
        cat, w_oihw.astype(jnp.float32),
        window_strides=(1, 1), padding=((P, P), (P, P)),
        dimension_numbers=('NCHW', 'OIHW', 'NCHW'),
        precision=jax.lax.Precision.HIGHEST)
    return jax.nn.sigmoid(y)                            # (N, 1, H, W)


if __name__ == "__main__":
    # Small shapes: N=2, C=4, H=W=16, kernel_size=7 (module default).
    N, C, H, W = 2, 4, 16, 16
    K = 7
    key = jax.random.PRNGKey(0)
    kx, kw = jax.random.split(key)

    x = jax.random.normal(kx, (N, C, H, W), jnp.float32)          # NCHW, as PyTorch
    w = 0.1 * jax.random.normal(kw, (1, 2, K, K), jnp.float32)    # Conv2d(2,1,7) weight

    out = spatial_attention_pallas(x, w, kernel_size=K)
    out = jax.block_until_ready(out)

    ref = spatial_attention_ref(x, w, kernel_size=K)
    ref = jax.block_until_ready(ref)

    assert out.shape == (N, 1, H, W), out.shape
    err = float(jnp.max(jnp.abs(out - ref)))
    assert err < 1e-3, f"max abs error {err}"

    print("KERNEL_OK")
</pallas_src>

<mosaic_0001>
module attributes {stable_mosaic.version = 11 : i64} {
  func.func @_spatial_attention_kernel(%arg0: i32, %arg1: memref<1x4x16x16xf32, #tpu.memory_space<vmem>>, %arg2: memref<98xf32, #tpu.memory_space<smem>>, %arg3: memref<1x16x16xf32, #tpu.memory_space<vmem>>, %arg4: memref<22x22xf32, #tpu.memory_space<vmem>>, %arg5: memref<22x22xf32, #tpu.memory_space<vmem>>) attributes {dimension_semantics = [#tpu.dimension_semantics<arbitrary>], iteration_bounds = array<i64: 2>, scalar_prefetch = 0 : i64, scratch_operands = 2 : i64, tpu.core_type = #tpu.core_type<tc>, window_params = [{transform_indices = @transform_0, window_bounds = array<i64: 1, 4, 16, 16>}, {transform_indices = @transform_1, window_bounds = array<i64: 98>}, {transform_indices = @transform_2, window_bounds = array<i64: 1, 16, 16>}]} {
    %c0_i32 = arith.constant 0 : i32
    %0 = arith.cmpi eq, %arg0, %c0_i32 : i32
    %1 = arith.extui %0 : i1 to i32
    %c0_i32_0 = arith.constant 0 : i32
    %2 = arith.cmpi ne, %1, %c0_i32_0 : i32
    scf.if %2 {
      %cst_222 = arith.constant 0.000000e+00 : f32
      %520 = vector.broadcast %cst_222 : f32 to vector<22x22xf32>
      %c0_223 = arith.constant 0 : index
      %c0_224 = arith.constant 0 : index
      %521 = vector.load %arg4[%c0_223, %c0_224] : memref<22x22xf32, #tpu.memory_space<vmem>>, vector<22x22xf32>
      tpu.vector_store %arg4[%c0_223, %c0_224], %520 {strides = array<i32>} : memref<22x22xf32, #tpu.memory_space<vmem>>, vector<22x22xf32>,
      %cst_225 = arith.constant 0.000000e+00 : f32
      %522 = vector.broadcast %cst_225 : f32 to vector<22x22xf32>
      %c0_226 = arith.constant 0 : index
      %c0_227 = arith.constant 0 : index
      %523 = vector.load %arg5[%c0_226, %c0_227] : memref<22x22xf32, #tpu.memory_space<vmem>>, vector<22x22xf32>
      tpu.vector_store %arg5[%c0_226, %c0_227], %522 {strides = array<i32>} : memref<22x22xf32, #tpu.memory_space<vmem>>, vector<22x22xf32>,
    } else {
    }
    %c0 = arith.constant 0 : index
    %c0_1 = arith.constant 0 : index
    %c0_2 = arith.constant 0 : index
    %c0_3 = arith.constant 0 : index
    %3 = vector.load %arg1[%c0, %c0_1, %c0_2, %c0_3] : memref<1x4x16x16xf32, #tpu.memory_space<vmem>>, vector<1x1x16x16xf32>
    %4 = vector.shape_cast %3 : vector<1x1x16x16xf32> to vector<16x16xf32>
    %c0_4 = arith.constant 0 : index
    %c1 = arith.constant 1 : index
    %c0_5 = arith.constant 0 : index
    %c0_6 = arith.constant 0 : index
    %5 = vector.load %arg1[%c0_4, %c1, %c0_5, %c0_6] : memref<1x4x16x16xf32, #tpu.memory_space<vmem>>, vector<1x1x16x16xf32>
    %6 = vector.shape_cast %5 : vector<1x1x16x16xf32> to vector<16x16xf32>
    %7 = arith.addf %4, %6 : vector<16x16xf32>
    %8 = arith.maximumf %4, %6 : vector<16x16xf32>
    %c0_7 = arith.constant 0 : index
    %c2 = arith.constant 2 : index
    %c0_8 = arith.constant 0 : index
    %c0_9 = arith.constant 0 : index
    %9 = vector.load %arg1[%c0_7, %c2, %c0_8, %c0_9] : memref<1x4x16x16xf32, #tpu.memory_space<vmem>>, vector<1x1x16x16xf32>
    %10 = vector.shape_cast %9 : vector<1x1x16x16xf32> to vector<16x16xf32>
    %11 = arith.addf %7, %10 : vector<16x16xf32>
    %12 = arith.maximumf %8, %10 : vector<16x16xf32>
    %c0_10 = arith.constant 0 : index
    %c3 = arith.constant 3 : index
    %c0_11 = arith.constant 0 : index
    %c0_12 = arith.constant 0 : index
    %13 = vector.load %arg1[%c0_10, %c3, %c0_11, %c0_12] : memref<1x4x16x16xf32, #tpu.memory_space<vmem>>, vector<1x1x16x16xf32>
    %14 = vector.shape_cast %13 : vector<1x1x16x16xf32> to vector<16x16xf32>
    %15 = arith.addf %11, %14 : vector<16x16xf32>
    %16 = arith.maximumf %12, %14 : vector<16x16xf32>
    %cst = arith.constant 2.500000e-01 : f32
    %17 = vector.broadcast %cst : f32 to vector<16x16xf32>
    %18 = arith.mulf %15, %17 : vector<16x16xf32>
    %c3_13 = arith.constant 3 : index
    %c3_14 = arith.constant 3 : index
    %19 = vector.load %arg4[%c3_13, %c3_14] : memref<22x22xf32, #tpu.memory_space<vmem>>, vector<16x16xf32>
    tpu.vector_store %arg4[%c3_13, %c3_14], %18 {strides = array<i32>} : memref<22x22xf32, #tpu.memory_space<vmem>>, vector<16x16xf32>,
    %c3_15 = arith.constant 3 : index
    %c3_16 = arith.constant 3 : index
    %20 = vector.load %arg5[%c3_15, %c3_16] : memref<22x22xf32, #tpu.memory_space<vmem>>, vector<16x16xf32>
    tpu.vector_store %arg5[%c3_15, %c3_16], %16 {strides = array<i32>} : memref<22x22xf32, #tpu.memory_space<vmem>>, vector<16x16xf32>,
    %cst_17 = arith.constant 0.000000e+00 : f32
    %21 = vector.broadcast %cst_17 : f32 to vector<16x16xf32>
    %c0_18 = arith.constant 0 : index
    %22 = memref.load %arg2[%c0_18] : memref<98xf32, #tpu.memory_space<smem>>
    %c49 = arith.constant 49 : index
    %23 = memref.load %arg2[%c49] : memref<98xf32, #tpu.memory_space<smem>>
    %c0_19 = arith.constant 0 : index
    %c0_20 = arith.constant 0 : index
    %24 = vector.load %arg4[%c0_19, %c0_20] : memref<22x22xf32, #tpu.memory_space<vmem>>, vector<16x16xf32>
    %25 = vector.broadcast %22 : f32 to vector<16x16xf32>
    %26 = arith.mulf %25, %24 : vector<16x16xf32>
    %27 = arith.addf %21, %26 : vector<16x16xf32>
    %c0_21 = arith.constant 0 : index
    %c0_22 = arith.constant 0 : index
    %28 = vector.load %arg5[%c0_21, %c0_22] : memref<22x22xf32, #tpu.memory_space<vmem>>, vector<16x16xf32>
    %29 = vector.broadcast %23 : f32 to vector<16x16xf32>
    %30 = arith.mulf %29, %28 : vector<16x16xf32>
    %31 = arith.addf %27, %30 : vector<16x16xf32>
    %c1_23 = arith.constant 1 : index
    %32 = memref.load %arg2[%c1_23] : memref<98xf32, #tpu.memory_space<smem>>
    %c50 = arith.constant 50 : index
    %33 = memref.load %arg2[%c50] : memref<98xf32, #tpu.memory_space<smem>>
    %c0_24 = arith.constant 0 : index
    %c1_25 = arith.constant 1 : index
    %34 = vector.load %arg4[%c0_24, %c1_25] : memref<22x22xf32, #tpu.memory_space<vmem>>, vector<16x16xf32>
    %35 = vector.broadcast %32 : f32 to vector<16x16xf32>
    %36 = arith.mulf %35, %34 : vector<16x16xf32>
    %37 = arith.addf %31, %36 : vector<16x16xf32>
    %c0_26 = arith.constant 0 : index
    %c1_27 = arith.constant 1 : index
    %38 = vector.load %arg5[%c0_26, %c1_27] : memref<22x22xf32, #tpu.memory_space<vmem>>, vector<16x16xf32>
    %39 = vector.broadcast %33 : f32 to vector<16x16xf32>
    %40 = arith.mulf %39, %38 : vector<16x16xf32>
    %41 = arith.addf %37, %40 : vector<16x16xf32>
    %c2_28 = arith.constant 2 : index
    %42 = memref.load %arg2[%c2_28] : memref<98xf32, #tpu.memory_space<smem>>
    %c51 = arith.constant 51 : index
    %43 = memref.load %arg2[%c51] : memref<98xf32, #tpu.memory_space<smem>>
    %c0_29 = arith.constant 0 : index
    %c2_30 = arith.constant 2 : index
    %44 = vector.load %arg4[%c0_29, %c2_30] : memref<22x22xf32, #tpu.memory_space<vmem>>, vector<16x16xf32>
    %45 = vector.broadcast %42 : f32 to vector<16x16xf32>
    %46 = arith.mulf %45, %44 : vector<16x16xf32>
    %47 = arith.addf %41, %46 : vector<16x16xf32>
    %c0_31 = arith.constant 0 : index
    %c2_32 = arith.constant 2 : index
    %48 = vector.load %arg5[%c0_31, %c2_32] : memref<22x22xf32, #tpu.memory_space<vmem>>, vector<16x16xf32>
    %49 = vector.broadcast %43 : f32 to vector<16x16xf32>
    %50 = arith.mulf %49, %48 : vector<16x16xf32>
    %51 = arith.addf %47, %50 : vector<16x16xf32>
    %c3_33 = arith.constant 3 : index
    %52 = memref.load %arg2[%c3_33] : memref<98xf32, #tpu.memory_space<smem>>
    %c52 = arith.constant 52 : index
    %53 = memref.load %arg2[%c52] : memref<98xf32, #tpu.memory_space<smem>>
    %c0_34 = arith.constant 0 : index
    %c3_35 = arith.constant 3 : index
    %54 = vector.load %arg4[%c0_34, %c3_35] : memref<22x22xf32, #tpu.memory_space<vmem>>, vector<16x16xf32>
    %55 = vector.broadcast %52 : f32 to vector<16x16xf32>
    %56 = arith.mulf %55, %54 : vector<16x16xf32>
    %57 = arith.addf %51, %56 : vector<16x16xf32>
    %c0_36 = arith.constant 0 : index
    %c3_37 = arith.constant 3 : index
    %58 = vector.load %arg5[%c0_36, %c3_37] : memref<22x22xf32, #tpu.memory_space<vmem>>, vector<16x16xf32>
    %59 = vector.broadcast %53 : f32 to vector<16x16xf32>
    %60 = arith.mulf %59, %58 : vector<16x16xf32>
    %61 = arith.addf %57, %60 : vector<16x16xf32>
    %c4 = arith.constant 4 : index
    %62 = memref.load %arg2[%c4] : memref<98xf32, #tpu.memory_space<smem>>
    %c53 = arith.constant 53 : index
    %63 = memref.load %arg2[%c53] : memref<98xf32, #tpu.memory_space<smem>>
    %c0_38 = arith.constant 0 : index
    %c4_39 = arith.constant 4 : index
    %64 = vector.load %arg4[%c0_38, %c4_39] : memref<22x22xf32, #tpu.memory_space<vmem>>, vector<16x16xf32>
    %65 = vector.broadcast %62 : f32 to vector<16x16xf32>
    %66 = arith.mulf %65, %64 : vector<16x16xf32>
    %67 = arith.addf %61, %66 : vector<16x16xf32>
    %c0_40 = arith.constant 0 : index
    %c4_41 = arith.constant 4 : index
    %68 = vector.load %arg5[%c0_40, %c4_41] : memref<22x22xf32, #tpu.memory_space<vmem>>, vector<16x16xf32>
    %69 = vector.broadcast %63 : f32 to vector<16x16xf32>
    %70 = arith.mulf %69, %68 : vector<16x16xf32>
    %71 = arith.addf %67, %70 : vector<16x16xf32>
    %c5 = arith.constant 5 : index
    %72 = memref.load %arg2[%c5] : memref<98xf32, #tpu.memory_space<smem>>
    %c54 = arith.constant 54 : index
    %73 = memref.load %arg2[%c54] : memref<98xf32, #tpu.memory_space<smem>>
    %c0_42 = arith.constant 0 : index
    %c5_43 = arith.constant 5 : index
    %74 = vector.load %arg4[%c0_42, %c5_43] : memref<22x22xf32, #tpu.memory_space<vmem>>, vector<16x16xf32>
    %75 = vector.broadcast %72 : f32 to vector<16x16xf32>
    %76 = arith.mulf %75, %74 : vector<16x16xf32>
    %77 = arith.addf %71, %76 : vector<16x16xf32>
    %c0_44 = arith.constant 0 : index
    %c5_45 = arith.constant 5 : index
    %78 = vector.load %arg5[%c0_44, %c5_45] : memref<22x22xf32, #tpu.memory_space<vmem>>, vector<16x16xf32>
    %79 = vector.broadcast %73 : f32 to vector<16x16xf32>
    %80 = arith.mulf %79, %78 : vector<16x16xf32>
    %81 = arith.addf %77, %80 : vector<16x16xf32>
    %c6 = arith.constant 6 : index
    %82 = memref.load %arg2[%c6] : memref<98xf32, #tpu.memory_space<smem>>
    %c55 = arith.constant 55 : index
    %83 = memref.load %arg2[%c55] : memref<98xf32, #tpu.memory_space<smem>>
    %c0_46 = arith.constant 0 : index
    %c6_47 = arith.constant 6 : index
    %84 = vector.load %arg4[%c0_46, %c6_47] : memref<22x22xf32, #tpu.memory_space<vmem>>, vector<16x16xf32>
    %85 = vector.broadcast %82 : f32 to vector<16x16xf32>
    %86 = arith.mulf %85, %84 : vector<16x16xf32>
    %87 = arith.addf %81, %86 : vector<16x16xf32>
    %c0_48 = arith.constant 0 : index
    %c6_49 = arith.constant 6 : index
    %88 = vector.load %arg5[%c0_48, %c6_49] : memref<22x22xf32, #tpu.memory_space<vmem>>, vector<16x16xf32>
    %89 = vector.broadcast %83 : f32 to vector<16x16xf32>
    %90 = arith.mulf %89, %88 : vector<16x16xf32>
    %91 = arith.addf %87, %90 : vector<16x16xf32>
    %c7 = arith.constant 7 : index
    %92 = memref.load %arg2[%c7] : memref<98xf32, #tpu.memory_space<smem>>
    %c56 = arith.constant 56 : index
    %93 = memref.load %arg2[%c56] : memref<98xf32, #tpu.memory_space<smem>>
    %c1_50 = arith.constant 1 : index
    %c0_51 = arith.constant 0 : index
    %94 = vector.load %arg4[%c1_50, %c0_51] : memref<22x22xf32, #tpu.memory_space<vmem>>, vector<16x16xf32>
    %95 = vector.broadcast %92 : f32 to vector<16x16xf32>
    %96 = arith.mulf %95, %94 : vector<16x16xf32>
    %97 = arith.addf %91, %96 : vector<16x16xf32>
    %c1_52 = arith.constant 1 : index
    %c0_53 = arith.constant 0 : index
    %98 = vector.load %arg5[%c1_52, %c0_53] : memref<22x22xf32, #tpu.memory_space<vmem>>, vector<16x16xf32>
    %99 = vector.broadcast %93 : f32 to vector<16x16xf32>
    %100 = arith.mulf %99, %98 : vector<16x16xf32>
    %101 = arith.addf %97, %100 : vector<16x16xf32>
    %c8 = arith.constant 8 : index
    %102 = memref.load %arg2[%c8] : memref<98xf32, #tpu.memory_space<smem>>
    %c57 = arith.constant 57 : index
    %103 = memref.load %arg2[%c57] : memref<98xf32, #tpu.memory_space<smem>>
    %c1_54 = arith.constant 1 : index
    %c1_55 = arith.constant 1 : index
    %104 = vector.load %arg4[%c1_54, %c1_55] : memref<22x22xf32, #tpu.memory_space<vmem>>, vector<16x16xf32>
    %105 = vector.broadcast %102 : f32 to vector<16x16xf32>
    %106 = arith.mulf %105, %104 : vector<16x16xf32>
    %107 = arith.addf %101, %106 : vector<16x16xf32>
    %c1_56 = arith.constant 1 : index
    %c1_57 = arith.constant 1 : index
    %108 = vector.load %arg5[%c1_56, %c1_57] : memref<22x22xf32, #tpu.memory_space<vmem>>, vector<16x16xf32>
    %109 = vector.broadcast %103 : f32 to vector<16x16xf32>
    %110 = arith.mulf %109, %108 : vector<16x16xf32>
    %111 = arith.addf %107, %110 : vector<16x16xf32>
    %c9 = arith.constant 9 : index
    %112 = memref.load %arg2[%c9] : memref<98xf32, #tpu.memory_space<smem>>
    %c58 = arith.constant 58 : index
    %113 = memref.load %arg2[%c58] : memref<98xf32, #tpu.memory_space<smem>>
    %c1_58 = arith.constant 1 : index
    %c2_59 = arith.constant 2 : index
    %114 = vector.load %arg4[%c1_58, %c2_59] : memref<22x22xf32, #tpu.memory_space<vmem>>, vector<16x16xf32>
    %115 = vector.broadcast %112 : f32 to vector<16x16xf32>
    %116 = arith.mulf %115, %114 : vector<16x16xf32>
    %117 = arith.addf %111, %116 : vector<16x16xf32>
    %c1_60 = arith.constant 1 : index
    %c2_61 = arith.constant 2 : index
    %118 = vector.load %arg5[%c1_60, %c2_61] : memref<22x22xf32, #tpu.memory_space<vmem>>, vector<16x16xf32>
    %119 = vector.broadcast %113 : f32 to vector<16x16xf32>
    %120 = arith.mulf %119, %118 : vector<16x16xf32>
    %121 = arith.addf %117, %120 : vector<16x16xf32>
    %c10 = arith.constant 10 : index
    %122 = memref.load %arg2[%c10] : memref<98xf32, #tpu.memory_space<smem>>
    %c59 = arith.constant 59 : index
    %123 = memref.load %arg2[%c59] : memref<98xf32, #tpu.memory_space<smem>>
    %c1_62 = arith.constant 1 : index
    %c3_63 = arith.constant 3 : index
    %124 = vector.load %arg4[%c1_62, %c3_63] : memref<22x22xf32, #tpu.memory_space<vmem>>, vector<16x16xf32>
    %125 = vector.broadcast %122 : f32 to vector<16x16xf32>
    %126 = arith.mulf %125, %124 : vector<16x16xf32>
    %127 = arith.addf %121, %126 : vector<16x16xf32>
    %c1_64 = arith.constant 1 : index
    %c3_65 = arith.constant 3 : index
    %128 = vector.load %arg5[%c1_64, %c3_65] : memref<22x22xf32, #tpu.memory_space<vmem>>, vector<16x16xf32>
    %129 = vector.broadcast %123 : f32 to vector<16x16xf32>
    %130 = arith.mulf %129, %128 : vector<16x16xf32>
    %131 = arith.addf %127, %130 : vector<16x16xf32>
    %c11 = arith.constant 11 : index
    %132 = memref.load %arg2[%c11] : memref<98xf32, #tpu.memory_space<smem>>
    %c60 = arith.constant 60 : index
    %133 = memref.load %arg2[%c60] : memref<98xf32, #tpu.memory_space<smem>>
    %c1_66 = arith.constant 1 : index
    %c4_67 = arith.constant 4 : index
    %134 = vector.load %arg4[%c1_66, %c4_67] : memref<22x22xf32, #tpu.memory_space<vmem>>, vector<16x16xf32>
    %135 = vector.broadcast %132 : f32 to vector<16x16xf32>
    %136 = arith.mulf %135, %134 : vector<16x16xf32>
    %137 = arith.addf %131, %136 : vector<16x16xf32>
    %c1_68 = arith.constant 1 : index
    %c4_69 = arith.constant 4 : index
    %138 = vector.load %arg5[%c1_68, %c4_69] : memref<22x22xf32, #tpu.memory_space<vmem>>, vector<16x16xf32>
    %139 = vector.broadcast %133 : f32 to vector<16x16xf32>
    %140 = arith.mulf %139, %138 : vector<16x16xf32>
    %141 = arith.addf %137, %140 : vector<16x16xf32>
    %c12 = arith.constant 12 : index
    %142 = memref.load %arg2[%c12] : memref<98xf32, #tpu.memory_space<smem>>
    %c61 = arith.constant 61 : index
    %143 = memref.load %arg2[%c61] : memref<98xf32, #tpu.memory_space<smem>>
    %c1_70 = arith.constant 1 : index
    %c5_71 = arith.constant 5 : index
    %144 = vector.load %arg4[%c1_70, %c5_71] : memref<22x22xf32, #tpu.memory_space<vmem>>, vector<16x16xf32>
    %145 = vector.broadcast %142 : f32 to vector<16x16xf32>
    %146 = arith.mulf %145, %144 : vector<16x16xf32>
    %147 = arith.addf %141, %146 : vector<16x16xf32>
    %c1_72 = arith.constant 1 : index
    %c5_73 = arith.constant 5 : index
    %148 = vector.load %arg5[%c1_72, %c5_73] : memref<22x22xf32, #tpu.memory_space<vmem>>, vector<16x16xf32>
    %149 = vector.broadcast %143 : f32 to vector<16x16xf32>
    %150 = arith.mulf %149, %148 : vector<16x16xf32>
    %151 = arith.addf %147, %150 : vector<16x16xf32>
    %c13 = arith.constant 13 : index
    %152 = memref.load %arg2[%c13] : memref<98xf32, #tpu.memory_space<smem>>
    %c62 = arith.constant 62 : index
    %153 = memref.load %arg2[%c62] : memref<98xf32, #tpu.memory_space<smem>>
    %c1_74 = arith.constant 1 : index
    %c6_75 = arith.constant 6 : index
    %154 = vector.load %arg4[%c1_74, %c6_75] : memref<22x22xf32, #tpu.memory_space<vmem>>, vector<16x16xf32>
    %155 = vector.broadcast %152 : f32 to vector<16x16xf32>
    %156 = arith.mulf %155, %154 : vector<16x16xf32>
    %157 = arith.addf %151, %156 : vector<16x16xf32>
    %c1_76 = arith.constant 1 : index
    %c6_77 = arith.constant 6 : index
    %158 = vector.load %arg5[%c1_76, %c6_77] : memref<22x22xf32, #tpu.memory_space<vmem>>, vector<16x16xf32>
    %159 = vector.broadcast %153 : f32 to vector<16x16xf32>
    %160 = arith.mulf %159, %158 : vector<16x16xf32>
    %161 = arith.addf %157, %160 : vector<16x16xf32>
    %c14 = arith.constant 14 : index
    %162 = memref.load %arg2[%c14] : memref<98xf32, #tpu.memory_space<smem>>
    %c63 = arith.constant 63 : index
    %163 = memref.load %arg2[%c63] : memref<98xf32, #tpu.memory_space<smem>>
    %c2_78 = arith.constant 2 : index
    %c0_79 = arith.constant 0 : index
    %164 = vector.load %arg4[%c2_78, %c0_79] : memref<22x22xf32, #tpu.memory_space<vmem>>, vector<16x16xf32>
    %165 = vector.broadcast %162 : f32 to vector<16x16xf32>
    %166 = arith.mulf %165, %164 : vector<16x16xf32>
    %167 = arith.addf %161, %166 : vector<16x16xf32>
    %c2_80 = arith.constant 2 : index
    %c0_81 = arith.constant 0 : index
    %168 = vector.load %arg5[%c2_80, %c0_81] : memref<22x22xf32, #tpu.memory_space<vmem>>, vector<16x16xf32>
    %169 = vector.broadcast %163 : f32 to vector<16x16xf32>
    %170 = arith.mulf %169, %168 : vector<16x16xf32>
    %171 = arith.addf %167, %170 : vector<16x16xf32>
    %c15 = arith.constant 15 : index
    %172 = memref.load %arg2[%c15] : memref<98xf32, #tpu.memory_space<smem>>
    %c64 = arith.constant 64 : index
    %173 = memref.load %arg2[%c64] : memref<98xf32, #tpu.memory_space<smem>>
    %c2_82 = arith.constant 2 : index
    %c1_83 = arith.constant 1 : index
    %174 = vector.load %arg4[%c2_82, %c1_83] : memref<22x22xf32, #tpu.memory_space<vmem>>, vector<16x16xf32>
    %175 = vector.broadcast %172 : f32 to vector<16x16xf32>
    %176 = arith.mulf %175, %174 : vector<16x16xf32>
    %177 = arith.addf %171, %176 : vector<16x16xf32>
    %c2_84 = arith.constant 2 : index
    %c1_85 = arith.constant 1 : index
    %178 = vector.load %arg5[%c2_84, %c1_85] : memref<22x22xf32, #tpu.memory_space<vmem>>, vector<16x16xf32>
    %179 = vector.broadcast %173 : f32 to vector<16x16xf32>
    %180 = arith.mulf %179, %178 : vector<16x16xf32>
    %181 = arith.addf %177, %180 : vector<16x16xf32>
    %c16 = arith.constant 16 : index
    %182 = memref.load %arg2[%c16] : memref<98xf32, #tpu.memory_space<smem>>
    %c65 = arith.constant 65 : index
    %183 = memref.load %arg2[%c65] : memref<98xf32, #tpu.memory_space<smem>>
    %c2_86 = arith.constant 2 : index
    %c2_87 = arith.constant 2 : index
    %184 = vector.load %arg4[%c2_86, %c2_87] : memref<22x22xf32, #tpu.memory_space<vmem>>, vector<16x16xf32>
    %185 = vector.broadcast %182 : f32 to vector<16x16xf32>
    %186 = arith.mulf %185, %184 : vector<16x16xf32>
    %187 = arith.addf %181, %186 : vector<16x16xf32>
    %c2_88 = arith.constant 2 : index
    %c2_89 = arith.constant 2 : index
    %188 = vector.load %arg5[%c2_88, %c2_89] : memref<22x22xf32, #tpu.memory_space<vmem>>, vector<16x16xf32>
    %189 = vector.broadcast %183 : f32 to vector<16x16xf32>
    %190 = arith.mulf %189, %188 : vector<16x16xf32>
    %191 = arith.addf %187, %190 : vector<16x16xf32>
    %c17 = arith.constant 17 : index
    %192 = memref.load %arg2[%c17] : memref<98xf32, #tpu.memory_space<smem>>
    %c66 = arith.constant 66 : index
    %193 = memref.load %arg2[%c66] : memref<98xf32, #tpu.memory_space<smem>>
    %c2_90 = arith.constant 2 : index
    %c3_91 = arith.constant 3 : index
    %194 = vector.load %arg4[%c2_90, %c3_91] : memref<22x22xf32, #tpu.memory_space<vmem>>, vector<16x16xf32>
    %195 = vector.broadcast %192 : f32 to vector<16x16xf32>
    %196 = arith.mulf %195, %194 : vector<16x16xf32>
    %197 = arith.addf %191, %196 : vector<16x16xf32>
    %c2_92 = arith.constant 2 : index
    %c3_93 = arith.constant 3 : index
    %198 = vector.load %arg5[%c2_92, %c3_93] : memref<22x22xf32, #tpu.memory_space<vmem>>, vector<16x16xf32>
    %199 = vector.broadcast %193 : f32 to vector<16x16xf32>
    %200 = arith.mulf %199, %198 : vector<16x16xf32>
    %201 = arith.addf %197, %200 : vector<16x16xf32>
    %c18 = arith.constant 18 : index
    %202 = memref.load %arg2[%c18] : memref<98xf32, #tpu.memory_space<smem>>
    %c67 = arith.constant 67 : index
    %203 = memref.load %arg2[%c67] : memref<98xf32, #tpu.memory_space<smem>>
    %c2_94 = arith.constant 2 : index
    %c4_95 = arith.constant 4 : index
    %204 = vector.load %arg4[%c2_94, %c4_95] : memref<22x22xf32, #tpu.memory_space<vmem>>, vector<16x16xf32>
    %205 = vector.broadcast %202 : f32 to vector<16x16xf32>
    %206 = arith.mulf %205, %204 : vector<16x16xf32>
    %207 = arith.addf %201, %206 : vector<16x16xf32>
    %c2_96 = arith.constant 2 : index
    %c4_97 = arith.constant 4 : index
    %208 = vector.load %arg5[%c2_96, %c4_97] : memref<22x22xf32, #tpu.memory_space<vmem>>, vector<16x16xf32>
    %209 = vector.broadcast %203 : f32 to vector<16x16xf32>
    %210 = arith.mulf %209, %208 : vector<16x16xf32>
    %211 = arith.addf %207, %210 : vector<16x16xf32>
    %c19 = arith.constant 19 : index
    %212 = memref.load %arg2[%c19] : memref<98xf32, #tpu.memory_space<smem>>
    %c68 = arith.constant 68 : index
    %213 = memref.load %arg2[%c68] : memref<98xf32, #tpu.memory_space<smem>>
    %c2_98 = arith.constant 2 : index
    %c5_99 = arith.constant 5 : index
    %214 = vector.load %arg4[%c2_98, %c5_99] : memref<22x22xf32, #tpu.memory_space<vmem>>, vector<16x16xf32>
    %215 = vector.broadcast %212 : f32 to vector<16x16xf32>
    %216 = arith.mulf %215, %214 : vector<16x16xf32>
    %217 = arith.addf %211, %216 : vector<16x16xf32>
    %c2_100 = arith.constant 2 : index
    %c5_101 = arith.constant 5 : index
    %218 = vector.load %arg5[%c2_100, %c5_101] : memref<22x22xf32, #tpu.memory_space<vmem>>, vector<16x16xf32>
    %219 = vector.broadcast %213 : f32 to vector<16x16xf32>
    %220 = arith.mulf %219, %218 : vector<16x16xf32>
    %221 = arith.addf %217, %220 : vector<16x16xf32>
    %c20 = arith.constant 20 : index
    %222 = memref.load %arg2[%c20] : memref<98xf32, #tpu.memory_space<smem>>
    %c69 = arith.constant 69 : index
    %223 = memref.load %arg2[%c69] : memref<98xf32, #tpu.memory_space<smem>>
    %c2_102 = arith.constant 2 : index
    %c6_103 = arith.constant 6 : index
    %224 = vector.load %arg4[%c2_102, %c6_103] : memref<22x22xf32, #tpu.memory_space<vmem>>, vector<16x16xf32>
    %225 = vector.broadcast %222 : f32 to vector<16x16xf32>
    %226 = arith.mulf %225, %224 : vector<16x16xf32>
    %227 = arith.addf %221, %226 : vector<16x16xf32>
    %c2_104 = arith.constant 2 : index
    %c6_105 = arith.constant 6 : index
    %228 = vector.load %arg5[%c2_104, %c6_105] : memref<22x22xf32, #tpu.memory_space<vmem>>, vector<16x16xf32>
    %229 = vector.broadcast %223 : f32 to vector<16x16xf32>
    %230 = arith.mulf %229, %228 : vector<16x16xf32>
    %231 = arith.addf %227, %230 : vector<16x16xf32>
    %c21 = arith.constant 21 : index
    %232 = memref.load %arg2[%c21] : memref<98xf32, #tpu.memory_space<smem>>
    %c70 = arith.constant 70 : index
    %233 = memref.load %arg2[%c70] : memref<98xf32, #tpu.memory_space<smem>>
    %c3_106 = arith.constant 3 : index
    %c0_107 = arith.constant 0 : index
    %234 = vector.load %arg4[%c3_106, %c0_107] : memref<22x22xf32, #tpu.memory_space<vmem>>, vector<16x16xf32>
    %235 = vector.broadcast %232 : f32 to vector<16x16xf32>
    %236 = arith.mulf %235, %234 : vector<16x16xf32>
    %237 = arith.addf %231, %236 : vector<16x16xf32>
    %c3_108 = arith.constant 3 : index
    %c0_109 = arith.constant 0 : index
    %238 = vector.load %arg5[%c3_108, %c0_109] : memref<22x22xf32, #tpu.memory_space<vmem>>, vector<16x16xf32>
    %239 = vector.broadcast %233 : f32 to vector<16x16xf32>
    %240 = arith.mulf %239, %238 : vector<16x16xf32>
    %241 = arith.addf %237, %240 : vector<16x16xf32>
    %c22 = arith.constant 22 : index
    %242 = memref.load %arg2[%c22] : memref<98xf32, #tpu.memory_space<smem>>
    %c71 = arith.constant 71 : index
    %243 = memref.load %arg2[%c71] : memref<98xf32, #tpu.memory_space<smem>>
    %c3_110 = arith.constant 3 : index
    %c1_111 = arith.constant 1 : index
    %244 = vector.load %arg4[%c3_110, %c1_111] : memref<22x22xf32, #tpu.memory_space<vmem>>, vector<16x16xf32>
    %245 = vector.broadcast %242 : f32 to vector<16x16xf32>
    %246 = arith.mulf %245, %244 : vector<16x16xf32>
    %247 = arith.addf %241, %246 : vector<16x16xf32>
    %c3_112 = arith.constant 3 : index
    %c1_113 = arith.constant 1 : index
    %248 = vector.load %arg5[%c3_112, %c1_113] : memref<22x22xf32, #tpu.memory_space<vmem>>, vector<16x16xf32>
    %249 = vector.broadcast %243 : f32 to vector<16x16xf32>
    %250 = arith.mulf %249, %248 : vector<16x16xf32>
    %251 = arith.addf %247, %250 : vector<16x16xf32>
    %c23 = arith.constant 23 : index
    %252 = memref.load %arg2[%c23] : memref<98xf32, #tpu.memory_space<smem>>
    %c72 = arith.constant 72 : index
    %253 = memref.load %arg2[%c72] : memref<98xf32, #tpu.memory_space<smem>>
    %c3_114 = arith.constant 3 : index
    %c2_115 = arith.constant 2 : index
    %254 = vector.load %arg4[%c3_114, %c2_115] : memref<22x22xf32, #tpu.memory_space<vmem>>, vector<16x16xf32>
    %255 = vector.broadcast %252 : f32 to vector<16x16xf32>
    %256 = arith.mulf %255, %254 : vector<16x16xf32>
    %257 = arith.addf %251, %256 : vector<16x16xf32>
    %c3_116 = arith.constant 3 : index
    %c2_117 = arith.constant 2 : index
    %258 = vector.load %arg5[%c3_116, %c2_117] : memref<22x22xf32, #tpu.memory_space<vmem>>, vector<16x16xf32>
    %259 = vector.broadcast %253 : f32 to vector<16x16xf32>
    %260 = arith.mulf %259, %258 : vector<16x16xf32>
    %261 = arith.addf %257, %260 : vector<16x16xf32>
    %c24 = arith.constant 24 : index
    %262 = memref.load %arg2[%c24] : memref<98xf32, #tpu.memory_space<smem>>
    %c73 = arith.constant 73 : index
    %263 = memref.load %arg2[%c73] : memref<98xf32, #tpu.memory_space<smem>>
    %c3_118 = arith.constant 3 : index
    %c3_119 = arith.constant 3 : index
    %264 = vector.load %arg4[%c3_118, %c3_119] : memref<22x22xf32, #tpu.memory_space<vmem>>, vector<16x16xf32>
    %265 = vector.broadcast %262 : f32 to vector<16x16xf32>
    %266 = arith.mulf %265, %264 : vector<16x16xf32>
    %267 = arith.addf %261, %266 : vector<16x16xf32>
    %c3_120 = arith.constant 3 : index
    %c3_121 = arith.constant 3 : index
    %268 = vector.load %arg5[%c3_120, %c3_121] : memref<22x22xf32, #tpu.memory_space<vmem>>, vector<16x16xf32>
    %269 = vector.broadcast %263 : f32 to vector<16x16xf32>
    %270 = arith.mulf %269, %268 : vector<16x16xf32>
    %271 = arith.addf %267, %270 : vector<16x16xf32>
    %c25 = arith.constant 25 : index
    %272 = memref.load %arg2[%c25] : memref<98xf32, #tpu.memory_space<smem>>
    %c74 = arith.constant 74 : index
    %273 = memref.load %arg2[%c74] : memref<98xf32, #tpu.memory_space<smem>>
    %c3_122 = arith.constant 3 : index
    %c4_123 = arith.constant 4 : index
    %274 = vector.load %arg4[%c3_122, %c4_123] : memref<22x22xf32, #tpu.memory_space<vmem>>, vector<16x16xf32>
    %275 = vector.broadcast %272 : f32 to vector<16x16xf32>
    %276 = arith.mulf %275, %274 : vector<16x16xf32>
    %277 = arith.addf %271, %276 : vector<16x16xf32>
    %c3_124 = arith.constant 3 : index
    %c4_125 = arith.constant 4 : index
    %278 = vector.load %arg5[%c3_124, %c4_125] : memref<22x22xf32, #tpu.memory_space<vmem>>, vector<16x16xf32>
    %279 = vector.broadcast %273 : f32 to vector<16x16xf32>
    %280 = arith.mulf %279, %278 : vector<16x16xf32>
    %281 = arith.addf %277, %280 : vector<16x16xf32>
    %c26 = arith.constant 26 : index
    %282 = memref.load %arg2[%c26] : memref<98xf32, #tpu.memory_space<smem>>
    %c75 = arith.constant 75 : index
    %283 = memref.load %arg2[%c75] : memref<98xf32, #tpu.memory_space<smem>>
    %c3_126 = arith.constant 3 : index
    %c5_127 = arith.constant 5 : index
    %284 = vector.load %arg4[%c3_126, %c5_127] : memref<22x22xf32, #tpu.memory_space<vmem>>, vector<16x16xf32>
    %285 = vector.broadcast %282 : f32 to vector<16x16xf32>
    %286 = arith.mulf %285, %284 : vector<16x16xf32>
    %287 = arith.addf %281, %286 : vector<16x16xf32>
    %c3_128 = arith.constant 3 : index
    %c5_129 = arith.constant 5 : index
    %288 = vector.load %arg5[%c3_128, %c5_129] : memref<22x22xf32, #tpu.memory_space<vmem>>, vector<16x16xf32>
    %289 = vector.broadcast %283 : f32 to vector<16x16xf32>
    %290 = arith.mulf %289, %288 : vector<16x16xf32>
    %291 = arith.addf %287, %290 : vector<16x16xf32>
    %c27 = arith.constant 27 : index
    %292 = memref.load %arg2[%c27] : memref<98xf32, #tpu.memory_space<smem>>
    %c76 = arith.constant 76 : index
    %293 = memref.load %arg2[%c76] : memref<98xf32, #tpu.memory_space<smem>>
    %c3_130 = arith.constant 3 : index
    %c6_131 = arith.constant 6 : index
    %294 = vector.load %arg4[%c3_130, %c6_131] : memref<22x22xf32, #tpu.memory_space<vmem>>, vector<16x16xf32>
    %295 = vector.broadcast %292 : f32 to vector<16x16xf32>
    %296 = arith.mulf %295, %294 : vector<16x16xf32>
    %297 = arith.addf %291, %296 : vector<16x16xf32>
    %c3_132 = arith.constant 3 : index
    %c6_133 = arith.constant 6 : index
    %298 = vector.load %arg5[%c3_132, %c6_133] : memref<22x22xf32, #tpu.memory_space<vmem>>, vector<16x16xf32>
    %299 = vector.broadcast %293 : f32 to vector<16x16xf32>
    %300 = arith.mulf %299, %298 : vector<16x16xf32>
    %301 = arith.addf %297, %300 : vector<16x16xf32>
    %c28 = arith.constant 28 : index
    %302 = memref.load %arg2[%c28] : memref<98xf32, #tpu.memory_space<smem>>
    %c77 = arith.constant 77 : index
    %303 = memref.load %arg2[%c77] : memref<98xf32, #tpu.memory_space<smem>>
    %c4_134 = arith.constant 4 : index
    %c0_135 = arith.constant 0 : index
    %304 = vector.load %arg4[%c4_134, %c0_135] : memref<22x22xf32, #tpu.memory_space<vmem>>, vector<16x16xf32>
    %305 = vector.broadcast %302 : f32 to vector<16x16xf32>
    %306 = arith.mulf %305, %304 : vector<16x16xf32>
    %307 = arith.addf %301, %306 : vector<16x16xf32>
    %c4_136 = arith.constant 4 : index
    %c0_137 = arith.constant 0 : index
    %308 = vector.load %arg5[%c4_136, %c0_137] : memref<22x22xf32, #tpu.memory_space<vmem>>, vector<16x16xf32>
    %309 = vector.broadcast %303 : f32 to vector<16x16xf32>
    %310 = arith.mulf %309, %308 : vector<16x16xf32>
    %311 = arith.addf %307, %310 : vector<16x16xf32>
    %c29 = arith.constant 29 : index
    %312 = memref.load %arg2[%c29] : memref<98xf32, #tpu.memory_space<smem>>
    %c78 = arith.constant 78 : index
    %313 = memref.load %arg2[%c78] : memref<98xf32, #tpu.memory_space<smem>>
    %c4_138 = arith.constant 4 : index
    %c1_139 = arith.constant 1 : index
    %314 = vector.load %arg4[%c4_138, %c1_139] : memref<22x22xf32, #tpu.memory_space<vmem>>, vector<16x16xf32>
    %315 = vector.broadcast %312 : f32 to vector<16x16xf32>
    %316 = arith.mulf %315, %314 : vector<16x16xf32>
    %317 = arith.addf %311, %316 : vector<16x16xf32>
    %c4_140 = arith.constant 4 : index
    %c1_141 = arith.constant 1 : index
    %318 = vector.load %arg5[%c4_140, %c1_141] : memref<22x22xf32, #tpu.memory_space<vmem>>, vector<16x16xf32>
    %319 = vector.broadcast %313 : f32 to vector<16x16xf32>
    %320 = arith.mulf %319, %318 : vector<16x16xf32>
    %321 = arith.addf %317, %320 : vector<16x16xf32>
    %c30 = arith.constant 30 : index
    %322 = memref.load %arg2[%c30] : memref<98xf32, #tpu.memory_space<smem>>
    %c79 = arith.constant 79 : index
    %323 = memref.load %arg2[%c79] : memref<98xf32, #tpu.memory_space<smem>>
    %c4_142 = arith.constant 4 : index
    %c2_143 = arith.constant 2 : index
    %324 = vector.load %arg4[%c4_142, %c2_143] : memref<22x22xf32, #tpu.memory_space<vmem>>, vector<16x16xf32>
    %325 = vector.broadcast %322 : f32 to vector<16x16xf32>
    %326 = arith.mulf %325, %324 : vector<16x16xf32>
    %327 = arith.addf %321, %326 : vector<16x16xf32>
    %c4_144 = arith.constant 4 : index
    %c2_145 = arith.constant 2 : index
    %328 = vector.load %arg5[%c4_144, %c2_145] : memref<22x22xf32, #tpu.memory_space<vmem>>, vector<16x16xf32>
    %329 = vector.broadcast %323 : f32 to vector<16x16xf32>
    %330 = arith.mulf %329, %328 : vector<16x16xf32>
    %331 = arith.addf %327, %330 : vector<16x16xf32>
    %c31 = arith.constant 31 : index
    %332 = memref.load %arg2[%c31] : memref<98xf32, #tpu.memory_space<smem>>
    %c80 = arith.constant 80 : index
    %333 = memref.load %arg2[%c80] : memref<98xf32, #tpu.memory_space<smem>>
    %c4_146 = arith.constant 4 : index
    %c3_147 = arith.constant 3 : index
    %334 = vector.load %arg4[%c4_146, %c3_147] : memref<22x22xf32, #tpu.memory_space<vmem>>, vector<16x16xf32>
    %335 = vector.broadcast %332 : f32 to vector<16x16xf32>
    %336 = arith.mulf %335, %334 : vector<16x16xf32>
    %337 = arith.addf %331, %336 : vector<16x16xf32>
    %c4_148 = arith.constant 4 : index
    %c3_149 = arith.constant 3 : index
    %338 = vector.load %arg5[%c4_148, %c3_149] : memref<22x22xf32, #tpu.memory_space<vmem>>, vector<16x16xf32>
    %339 = vector.broadcast %333 : f32 to vector<16x16xf32>
    %340 = arith.mulf %339, %338 : vector<16x16xf32>
    %341 = arith.addf %337, %340 : vector<16x16xf32>
    %c32 = arith.constant 32 : index
    %342 = memref.load %arg2[%c32] : memref<98xf32, #tpu.memory_space<smem>>
    %c81 = arith.constant 81 : index
    %343 = memref.load %arg2[%c81] : memref<98xf32, #tpu.memory_space<smem>>
    %c4_150 = arith.constant 4 : index
    %c4_151 = arith.constant 4 : index
    %344 = vector.load %arg4[%c4_150, %c4_151] : memref<22x22xf32, #tpu.memory_space<vmem>>, vector<16x16xf32>
    %345 = vector.broadcast %342 : f32 to vector<16x16xf32>
    %346 = arith.mulf %345, %344 : vector<16x16xf32>
    %347 = arith.addf %341, %346 : vector<16x16xf32>
    %c4_152 = arith.constant 4 : index
    %c4_153 = arith.constant 4 : index
    %348 = vector.load %arg5[%c4_152, %c4_153] : memref<22x22xf32, #tpu.memory_space<vmem>>, vector<16x16xf32>
    %349 = vector.broadcast %343 : f32 to vector<16x16xf32>
    %350 = arith.mulf %349, %348 : vector<16x16xf32>
    %351 = arith.addf %347, %350 : vector<16x16xf32>
    %c33 = arith.constant 33 : index
    %352 = memref.load %arg2[%c33] : memref<98xf32, #tpu.memory_space<smem>>
    %c82 = arith.constant 82 : index
    %353 = memref.load %arg2[%c82] : memref<98xf32, #tpu.memory_space<smem>>
    %c4_154 = arith.constant 4 : index
    %c5_155 = arith.constant 5 : index
    %354 = vector.load %arg4[%c4_154, %c5_155] : memref<22x22xf32, #tpu.memory_space<vmem>>, vector<16x16xf32>
    %355 = vector.broadcast %352 : f32 to vector<16x16xf32>
    %356 = arith.mulf %355, %354 : vector<16x16xf32>
    %357 = arith.addf %351, %356 : vector<16x16xf32>
    %c4_156 = arith.constant 4 : index
    %c5_157 = arith.constant 5 : index
    %358 = vector.load %arg5[%c4_156, %c5_157] : memref<22x22xf32, #tpu.memory_space<vmem>>, vector<16x16xf32>
    %359 = vector.broadcast %353 : f32 to vector<16x16xf32>
    %360 = arith.mulf %359, %358 : vector<16x16xf32>
    %361 = arith.addf %357, %360 : vector<16x16xf32>
    %c34 = arith.constant 34 : index
    %362 = memref.load %arg2[%c34] : memref<98xf32, #tpu.memory_space<smem>>
    %c83 = arith.constant 83 : index
    %363 = memref.load %arg2[%c83] : memref<98xf32, #tpu.memory_space<smem>>
    %c4_158 = arith.constant 4 : index
    %c6_159 = arith.constant 6 : index
    %364 = vector.load %arg4[%c4_158, %c6_159] : memref<22x22xf32, #tpu.memory_space<vmem>>, vector<16x16xf32>
    %365 = vector.broadcast %362 : f32 to vector<16x16xf32>
    %366 = arith.mulf %365, %364 : vector<16x16xf32>
    %367 = arith.addf %361, %366 : vector<16x16xf32>
    %c4_160 = arith.constant 4 : index
    %c6_161 = arith.constant 6 : index
    %368 = vector.load %arg5[%c4_160, %c6_161] : memref<22x22xf32, #tpu.memory_space<vmem>>, vector<16x16xf32>
    %369 = vector.broadcast %363 : f32 to vector<16x16xf32>
    %370 = arith.mulf %369, %368 : vector<16x16xf32>
    %371 = arith.addf %367, %370 : vector<16x16xf32>
    %c35 = arith.constant 35 : index
    %372 = memref.load %arg2[%c35] : memref<98xf32, #tpu.memory_space<smem>>
    %c84 = arith.constant 84 : index
    %373 = memref.load %arg2[%c84] : memref<98xf32, #tpu.memory_space<smem>>
    %c5_162 = arith.constant 5 : index
    %c0_163 = arith.constant 0 : index
    %374 = vector.load %arg4[%c5_162, %c0_163] : memref<22x22xf32, #tpu.memory_space<vmem>>, vector<16x16xf32>
    %375 = vector.broadcast %372 : f32 to vector<16x16xf32>
    %376 = arith.mulf %375, %374 : vector<16x16xf32>
    %377 = arith.addf %371, %376 : vector<16x16xf32>
    %c5_164 = arith.constant 5 : index
    %c0_165 = arith.constant 0 : index
    %378 = vector.load %arg5[%c5_164, %c0_165] : memref<22x22xf32, #tpu.memory_space<vmem>>, vector<16x16xf32>
    %379 = vector.broadcast %373 : f32 to vector<16x16xf32>
    %380 = arith.mulf %379, %378 : vector<16x16xf32>
    %381 = arith.addf %377, %380 : vector<16x16xf32>
    %c36 = arith.constant 36 : index
    %382 = memref.load %arg2[%c36] : memref<98xf32, #tpu.memory_space<smem>>
    %c85 = arith.constant 85 : index
    %383 = memref.load %arg2[%c85] : memref<98xf32, #tpu.memory_space<smem>>
    %c5_166 = arith.constant 5 : index
    %c1_167 = arith.constant 1 : index
    %384 = vector.load %arg4[%c5_166, %c1_167] : memref<22x22xf32, #tpu.memory_space<vmem>>, vector<16x16xf32>
    %385 = vector.broadcast %382 : f32 to vector<16x16xf32>
    %386 = arith.mulf %385, %384 : vector<16x16xf32>
    %387 = arith.addf %381, %386 : vector<16x16xf32>
    %c5_168 = arith.constant 5 : index
    %c1_169 = arith.constant 1 : index
    %388 = vector.load %arg5[%c5_168, %c1_169] : memref<22x22xf32, #tpu.memory_space<vmem>>, vector<16x16xf32>
    %389 = vector.broadcast %383 : f32 to vector<16x16xf32>
    %390 = arith.mulf %389, %388 : vector<16x16xf32>
    %391 = arith.addf %387, %390 : vector<16x16xf32>
    %c37 = arith.constant 37 : index
    %392 = memref.load %arg2[%c37] : memref<98xf32, #tpu.memory_space<smem>>
    %c86 = arith.constant 86 : index
    %393 = memref.load %arg2[%c86] : memref<98xf32, #tpu.memory_space<smem>>
    %c5_170 = arith.constant 5 : index
    %c2_171 = arith.constant 2 : index
    %394 = vector.load %arg4[%c5_170, %c2_171] : memref<22x22xf32, #tpu.memory_space<vmem>>, vector<16x16xf32>
    %395 = vector.broadcast %392 : f32 to vector<16x16xf32>
    %396 = arith.mulf %395, %394 : vector<16x16xf32>
    %397 = arith.addf %391, %396 : vector<16x16xf32>
    %c5_172 = arith.constant 5 : index
    %c2_173 = arith.constant 2 : index
    %398 = vector.load %arg5[%c5_172, %c2_173] : memref<22x22xf32, #tpu.memory_space<vmem>>, vector<16x16xf32>
    %399 = vector.broadcast %393 : f32 to vector<16x16xf32>
    %400 = arith.mulf %399, %398 : vector<16x16xf32>
    %401 = arith.addf %397, %400 : vector<16x16xf32>
    %c38 = arith.constant 38 : index
    %402 = memref.load %arg2[%c38] : memref<98xf32, #tpu.memory_space<smem>>
    %c87 = arith.constant 87 : index
    %403 = memref.load %arg2[%c87] : memref<98xf32, #tpu.memory_space<smem>>
    %c5_174 = arith.constant 5 : index
    %c3_175 = arith.constant 3 : index
    %404 = vector.load %arg4[%c5_174, %c3_175] : memref<22x22xf32, #tpu.memory_space<vmem>>, vector<16x16xf32>
    %405 = vector.broadcast %402 : f32 to vector<16x16xf32>
    %406 = arith.mulf %405, %404 : vector<16x16xf32>
    %407 = arith.addf %401, %406 : vector<16x16xf32>
    %c5_176 = arith.constant 5 : index
    %c3_177 = arith.constant 3 : index
    %408 = vector.load %arg5[%c5_176, %c3_177] : memref<22x22xf32, #tpu.memory_space<vmem>>, vector<16x16xf32>
    %409 = vector.broadcast %403 : f32 to vector<16x16xf32>
    %410 = arith.mulf %409, %408 : vector<16x16xf32>
    %411 = arith.addf %407, %410 : vector<16x16xf32>
    %c39 = arith.constant 39 : index
    %412 = memref.load %arg2[%c39] : memref<98xf32, #tpu.memory_space<smem>>
    %c88 = arith.constant 88 : index
    %413 = memref.load %arg2[%c88] : memref<98xf32, #tpu.memory_space<smem>>
    %c5_178 = arith.constant 5 : index
    %c4_179 = arith.constant 4 : index
    %414 = vector.load %arg4[%c5_178, %c4_179] : memref<22x22xf32, #tpu.memory_space<vmem>>, vector<16x16xf32>
    %415 = vector.broadcast %412 : f32 to vector<16x16xf32>
    %416 = arith.mulf %415, %414 : vector<16x16xf32>
    %417 = arith.addf %411, %416 : vector<16x16xf32>
    %c5_180 = arith.constant 5 : index
    %c4_181 = arith.constant 4 : index
    %418 = vector.load %arg5[%c5_180, %c4_181] : memref<22x22xf32, #tpu.memory_space<vmem>>, vector<16x16xf32>
    %419 = vector.broadcast %413 : f32 to vector<16x16xf32>
    %420 = arith.mulf %419, %418 : vector<16x16xf32>
    %421 = arith.addf %417, %420 : vector<16x16xf32>
    %c40 = arith.constant 40 : index
    %422 = memref.load %arg2[%c40] : memref<98xf32, #tpu.memory_space<smem>>
    %c89 = arith.constant 89 : index
    %423 = memref.load %arg2[%c89] : memref<98xf32, #tpu.memory_space<smem>>
    %c5_182 = arith.constant 5 : index
    %c5_183 = arith.constant 5 : index
    %424 = vector.load %arg4[%c5_182, %c5_183] : memref<22x22xf32, #tpu.memory_space<vmem>>, vector<16x16xf32>
    %425 = vector.broadcast %422 : f32 to vector<16x16xf32>
    %426 = arith.mulf %425, %424 : vector<16x16xf32>
    %427 = arith.addf %421, %426 : vector<16x16xf32>
    %c5_184 = arith.constant 5 : index
    %c5_185 = arith.constant 5 : index
    %428 = vector.load %arg5[%c5_184, %c5_185] : memref<22x22xf32, #tpu.memory_space<vmem>>, vector<16x16xf32>
    %429 = vector.broadcast %423 : f32 to vector<16x16xf32>
    %430 = arith.mulf %429, %428 : vector<16x16xf32>
    %431 = arith.addf %427, %430 : vector<16x16xf32>
    %c41 = arith.constant 41 : index
    %432 = memref.load %arg2[%c41] : memref<98xf32, #tpu.memory_space<smem>>
    %c90 = arith.constant 90 : index
    %433 = memref.load %arg2[%c90] : memref<98xf32, #tpu.memory_space<smem>>
    %c5_186 = arith.constant 5 : index
    %c6_187 = arith.constant 6 : index
    %434 = vector.load %arg4[%c5_186, %c6_187] : memref<22x22xf32, #tpu.memory_space<vmem>>, vector<16x16xf32>
    %435 = vector.broadcast %432 : f32 to vector<16x16xf32>
    %436 = arith.mulf %435, %434 : vector<16x16xf32>
    %437 = arith.addf %431, %436 : vector<16x16xf32>
    %c5_188 = arith.constant 5 : index
    %c6_189 = arith.constant 6 : index
    %438 = vector.load %arg5[%c5_188, %c6_189] : memref<22x22xf32, #tpu.memory_space<vmem>>, vector<16x16xf32>
    %439 = vector.broadcast %433 : f32 to vector<16x16xf32>
    %440 = arith.mulf %439, %438 : vector<16x16xf32>
    %441 = arith.addf %437, %440 : vector<16x16xf32>
    %c42 = arith.constant 42 : index
    %442 = memref.load %arg2[%c42] : memref<98xf32, #tpu.memory_space<smem>>
    %c91 = arith.constant 91 : index
    %443 = memref.load %arg2[%c91] : memref<98xf32, #tpu.memory_space<smem>>
    %c6_190 = arith.constant 6 : index
    %c0_191 = arith.constant 0 : index
    %444 = vector.load %arg4[%c6_190, %c0_191] : memref<22x22xf32, #tpu.memory_space<vmem>>, vector<16x16xf32>
    %445 = vector.broadcast %442 : f32 to vector<16x16xf32>
    %446 = arith.mulf %445, %444 : vector<16x16xf32>
    %447 = arith.addf %441, %446 : vector<16x16xf32>
    %c6_192 = arith.constant 6 : index
    %c0_193 = arith.constant 0 : index
    %448 = vector.load %arg5[%c6_192, %c0_193] : memref<22x22xf32, #tpu.memory_space<vmem>>, vector<16x16xf32>
    %449 = vector.broadcast %443 : f32 to vector<16x16xf32>
    %450 = arith.mulf %449, %448 : vector<16x16xf32>
    %451 = arith.addf %447, %450 : vector<16x16xf32>
    %c43 = arith.constant 43 : index
    %452 = memref.load %arg2[%c43] : memref<98xf32, #tpu.memory_space<smem>>
    %c92 = arith.constant 92 : index
    %453 = memref.load %arg2[%c92] : memref<98xf32, #tpu.memory_space<smem>>
    %c6_194 = arith.constant 6 : index
    %c1_195 = arith.constant 1 : index
    %454 = vector.load %arg4[%c6_194, %c1_195] : memref<22x22xf32, #tpu.memory_space<vmem>>, vector<16x16xf32>
    %455 = vector.broadcast %452 : f32 to vector<16x16xf32>
    %456 = arith.mulf %455, %454 : vector<16x16xf32>
    %457 = arith.addf %451, %456 : vector<16x16xf32>
    %c6_196 = arith.constant 6 : index
    %c1_197 = arith.constant 1 : index
    %458 = vector.load %arg5[%c6_196, %c1_197] : memref<22x22xf32, #tpu.memory_space<vmem>>, vector<16x16xf32>
    %459 = vector.broadcast %453 : f32 to vector<16x16xf32>
    %460 = arith.mulf %459, %458 : vector<16x16xf32>
    %461 = arith.addf %457, %460 : vector<16x16xf32>
    %c44 = arith.constant 44 : index
    %462 = memref.load %arg2[%c44] : memref<98xf32, #tpu.memory_space<smem>>
    %c93 = arith.constant 93 : index
    %463 = memref.load %arg2[%c93] : memref<98xf32, #tpu.memory_space<smem>>
    %c6_198 = arith.constant 6 : index
    %c2_199 = arith.constant 2 : index
    %464 = vector.load %arg4[%c6_198, %c2_199] : memref<22x22xf32, #tpu.memory_space<vmem>>, vector<16x16xf32>
    %465 = vector.broadcast %462 : f32 to vector<16x16xf32>
    %466 = arith.mulf %465, %464 : vector<16x16xf32>
    %467 = arith.addf %461, %466 : vector<16x16xf32>
    %c6_200 = arith.constant 6 : index
    %c2_201 = arith.constant 2 : index
    %468 = vector.load %arg5[%c6_200, %c2_201] : memref<22x22xf32, #tpu.memory_space<vmem>>, vector<16x16xf32>
    %469 = vector.broadcast %463 : f32 to vector<16x16xf32>
    %470 = arith.mulf %469, %468 : vector<16x16xf32>
    %471 = arith.addf %467, %470 : vector<16x16xf32>
    %c45 = arith.constant 45 : index
    %472 = memref.load %arg2[%c45] : memref<98xf32, #tpu.memory_space<smem>>
    %c94 = arith.constant 94 : index
    %473 = memref.load %arg2[%c94] : memref<98xf32, #tpu.memory_space<smem>>
    %c6_202 = arith.constant 6 : index
    %c3_203 = arith.constant 3 : index
    %474 = vector.load %arg4[%c6_202, %c3_203] : memref<22x22xf32, #tpu.memory_space<vmem>>, vector<16x16xf32>
    %475 = vector.broadcast %472 : f32 to vector<16x16xf32>
    %476 = arith.mulf %475, %474 : vector<16x16xf32>
    %477 = arith.addf %471, %476 : vector<16x16xf32>
    %c6_204 = arith.constant 6 : index
    %c3_205 = arith.constant 3 : index
    %478 = vector.load %arg5[%c6_204, %c3_205] : memref<22x22xf32, #tpu.memory_space<vmem>>, vector<16x16xf32>
    %479 = vector.broadcast %473 : f32 to vector<16x16xf32>
    %480 = arith.mulf %479, %478 : vector<16x16xf32>
    %481 = arith.addf %477, %480 : vector<16x16xf32>
    %c46 = arith.constant 46 : index
    %482 = memref.load %arg2[%c46] : memref<98xf32, #tpu.memory_space<smem>>
    %c95 = arith.constant 95 : index
    %483 = memref.load %arg2[%c95] : memref<98xf32, #tpu.memory_space<smem>>
    %c6_206 = arith.constant 6 : index
    %c4_207 = arith.constant 4 : index
    %484 = vector.load %arg4[%c6_206, %c4_207] : memref<22x22xf32, #tpu.memory_space<vmem>>, vector<16x16xf32>
    %485 = vector.broadcast %482 : f32 to vector<16x16xf32>
    %486 = arith.mulf %485, %484 : vector<16x16xf32>
    %487 = arith.addf %481, %486 : vector<16x16xf32>
    %c6_208 = arith.constant 6 : index
    %c4_209 = arith.constant 4 : index
    %488 = vector.load %arg5[%c6_208, %c4_209] : memref<22x22xf32, #tpu.memory_space<vmem>>, vector<16x16xf32>
    %489 = vector.broadcast %483 : f32 to vector<16x16xf32>
    %490 = arith.mulf %489, %488 : vector<16x16xf32>
    %491 = arith.addf %487, %490 : vector<16x16xf32>
    %c47 = arith.constant 47 : index
    %492 = memref.load %arg2[%c47] : memref<98xf32, #tpu.memory_space<smem>>
    %c96 = arith.constant 96 : index
    %493 = memref.load %arg2[%c96] : memref<98xf32, #tpu.memory_space<smem>>
    %c6_210 = arith.constant 6 : index
    %c5_211 = arith.constant 5 : index
    %494 = vector.load %arg4[%c6_210, %c5_211] : memref<22x22xf32, #tpu.memory_space<vmem>>, vector<16x16xf32>
    %495 = vector.broadcast %492 : f32 to vector<16x16xf32>
    %496 = arith.mulf %495, %494 : vector<16x16xf32>
    %497 = arith.addf %491, %496 : vector<16x16xf32>
    %c6_212 = arith.constant 6 : index
    %c5_213 = arith.constant 5 : index
    %498 = vector.load %arg5[%c6_212, %c5_213] : memref<22x22xf32, #tpu.memory_space<vmem>>, vector<16x16xf32>
    %499 = vector.broadcast %493 : f32 to vector<16x16xf32>
    %500 = arith.mulf %499, %498 : vector<16x16xf32>
    %501 = arith.addf %497, %500 : vector<16x16xf32>
    %c48 = arith.constant 48 : index
    %502 = memref.load %arg2[%c48] : memref<98xf32, #tpu.memory_space<smem>>
    %c97 = arith.constant 97 : index
    %503 = memref.load %arg2[%c97] : memref<98xf32, #tpu.memory_space<smem>>
    %c6_214 = arith.constant 6 : index
    %c6_215 = arith.constant 6 : index
    %504 = vector.load %arg4[%c6_214, %c6_215] : memref<22x22xf32, #tpu.memory_space<vmem>>, vector<16x16xf32>
    %505 = vector.broadcast %502 : f32 to vector<16x16xf32>
    %506 = arith.mulf %505, %504 : vector<16x16xf32>
    %507 = arith.addf %501, %506 : vector<16x16xf32>
    %c6_216 = arith.constant 6 : index
    %c6_217 = arith.constant 6 : index
    %508 = vector.load %arg5[%c6_216, %c6_217] : memref<22x22xf32, #tpu.memory_space<vmem>>, vector<16x16xf32>
    %509 = vector.broadcast %503 : f32 to vector<16x16xf32>
    %510 = arith.mulf %509, %508 : vector<16x16xf32>
    %511 = arith.addf %507, %510 : vector<16x16xf32>
    %512 = arith.negf %511 : vector<16x16xf32>
    %513 = math.exp %512 : vector<16x16xf32>
    %cst_218 = arith.constant 1.000000e+00 : f32
    %514 = vector.broadcast %cst_218 : f32 to vector<16x16xf32>
    %515 = arith.addf %514, %513 : vector<16x16xf32>
    %516 = arith.divf %514, %515 : vector<16x16xf32>
    %c0_219 = arith.constant 0 : index
    %c0_220 = arith.constant 0 : index
    %c0_221 = arith.constant 0 : index
    %517 = vector.load %arg3[%c0_219, %c0_220, %c0_221] : memref<1x16x16xf32, #tpu.memory_space<vmem>>, vector<1x16x16xf32>
    %518 = vector.shape_cast %517 : vector<1x16x16xf32> to vector<16x16xf32>
    %519 = vector.shape_cast %516 : vector<16x16xf32> to vector<1x16x16xf32>
    tpu.vector_store %arg3[%c0_219, %c0_220, %c0_221], %519 {strides = array<i32>} : memref<1x16x16xf32, #tpu.memory_space<vmem>>, vector<1x16x16xf32>,
    return
  }
  func.func @transform_0(%arg0: i32) -> (i32, i32, i32, i32) {
    %c0_i32 = arith.constant 0 : i32
    %c0_i32_0 = arith.constant 0 : i32
    %c0_i32_1 = arith.constant 0 : i32
    %c0_i32_2 = arith.constant 0 : i32
    return %arg0, %c0_i32, %c0_i32_0, %c0_i32_1 : i32, i32, i32, i32
  }
  func.func @transform_1(%arg0: i32) -> i32 {
    %c0_i32 = arith.constant 0 : i32
    %c0_i32_0 = arith.constant 0 : i32
    return %c0_i32 : i32
  }
  func.func @transform_2(%arg0: i32) -> (i32, i32, i32) {
    %c0_i32 = arith.constant 0 : i32
    %c0_i32_0 = arith.constant 0 : i32
    %c0_i32_1 = arith.constant 0 : i32
    return %arg0, %c0_i32, %c0_i32_0 : i32, i32, i32
  }
}

</mosaic_0001>

<bundles_post_ra>
// kernel: tpu_custom_call.1
= control target key start
LH: loop header
LB: loop body
LE: loop exit
PB: predicated region body
PF: predicated region fallthrough
CT: control target
= control target key end

     0   :  { %7 = vsyncpa [#allocation5], 0  ;;  %s2882_s0 = inlined_call_operand.hbm [shape: f32[2,4,16,16], index: 0, kind: input, shape index: {}]   ;;  %s2883_s1 = inlined_call_operand.hbm [shape: f32[98], index: 1, kind: input, shape index: {}]   ;;  %s2884_s2 = inlined_call_operand.hbm [shape: f32[2,16,16], index: 2, kind: output, shape index: {}]  }
   0x1   :  { %9 = vsyncpa [#allocation5 + $0x1], 0 }
   0x2   :  { %10 = vsyncpa [#allocation7], 0 }
   0x3   :  { %11 = vsyncpa [#allocation6], 0 }
   0x4   :  { %13 = vsyncpa [#allocation6 + $0x1], 0  ;;  %s2012_s9 = smov 0   ;;  %s2014_s10 = smov 0  }
   0x5   :  { %s2016_s11 = smov 0   ;;  %s2018_s12 = smov 0  }
   0x6 LB: > { %s2033_s13 = sadd.s32 4294967295, %s1982_s12   ;;  %s1666_s14 = sadd.s32 4294967294, %s1982_s12   ;;  %s1982_s12 = sphi %s2018_s12, %s2896_s12   ;;  %s1978_s11 = sphi %s2016_s11, %s2895_s11   ;;  %s1974_s10 = sphi %s2014_s10, %s2894_s10   ;;  %s1970_s9 = sphi %s2012_s9, %s2893_s9  }
   0x7   : > { %s2037_s15 = sadd.s32 1, %s1982_s12   ;;  %s26_s16 = sadd.s32 1, %s1978_s11 }
   0x8   : > { %s23_s17 = ssub.s32 %s1982_s12, %s2037_s15  ;;  %p33_p0 = scmp.ne.s32.totalorder %s1978_s11, %s1974_s10 }
   0x9   : > { %p24_p1 = scmp.eq.s32.totalorder %s23_s17, 0  ;;  %p34_p2 = scmp.eq.s32.totalorder %s1982_s12, 0 }
   0xa   : > { %p39_p3 = scmp.ne.s32.totalorder %s1974_s10, %s1970_s9  ;;  %p40_p4 = scmp.eq.s32.totalorder %s2033_s13, 0 }
   0xb   : > { %s2049_s18 = scalar_select %p24_p1, %s1978_s11, %s26_s16  }
   0xc   : > { %p2051_p5 = por %p34_p2, %p33_p0  ;;  %p2057_p6 = por %p40_p4, %p39_p3 }
   0xd   : > { %p84_p7 = scmp.eq.s32.totalorder %s2033_s13, 1  ;;  %p90_p8 = scmp.eq.s32.totalorder %s1666_s14, 1 }
   0xe   : > { %p1667_p9 = scmp.ge.s32.totalorder %s1982_s12, 1  ;;  %p97_p10 = scmp.lt.s32.totalorder %s1982_s12, 3 }
   0xf   : > { %p2064_p11 = por %p84_p7, %p33_p0  ;;  %p2068_p12 = por %p90_p8, %p39_p3 }
  0x10   : > { %p2072_p13 = pnand %p1667_p9, %p97_p10  ;;  %s109_s26 = sshll.u32 %s2883_s1, 4  ;;  %s110_s26 = int_to_ptr.hbm [resolvable:$true] %s109_s26 }
  0x11   : > { %p1811_p7 = scmp.lt.s32.totalorder %s1982_s12, 2  ;;  %s120_s27 = sand.u32 1, %s1978_s11  }
  0x12   : > { %p1798_p2 = pneg %p2072_p13  ;;  %s1670_s29 = sshll.u32 %s120_s27, 6 }
  0x13   : > { %p2089_p8 = pnand %p1811_p7, %p2051_p5  ;;  %s1984_s30 = smov [#allocation8]  }
  0x14   : > { %p1799_p3 = pnand %p1798_p2, %p40_p4  ;;  %s1788_s3 = sshll.u32 %s1982_s12, 6 }
  0x15   : > { %s124_s4 = scalar_lea.vmem [#allocation4], %s1670_s29  ;;  %s129_s8 = scalar_lea.hbm %s2882_s0, %s1788_s3 }
  0x16   : > { %1801 = dma.hbm_to_smem (!%p1799_p3), %s110_s26, 16, %s1984_s30, [#allocation7]  }
  0x17   : > { %s132_s5 = sshll.u32 %s124_s4, 4  ;;  %s130_s14 = sshll.u32 %s129_s8, 4  ;;  %s133_s5 = int_to_ptr.vmem [resolvable:$true] %s132_s5  ;;  %s131_s14 = int_to_ptr.hbm [resolvable:$true] %s130_s14 }
  0x18   : > { %s121_s16 = scalar_lea.sflag [#allocation5], %s120_s27  ;;  %s1882_s17 = sshra.s32 %s131_s14, 4  ;;  %s1883_s17 = int_to_ptr.hbm [resolvable:$true] %s1882_s17 }
  0x19   : > { %s1884_s19 = scalar_lea.hbm %s1883_s17, 64  ;;  %p1886_p9 = pneg %p2089_p8 }
  0x1a   : > { %p1885_p5 = scmp.ne.s32.totalorder %s1883_s17, %s1884_s19  ;;  %s1889_s26 = scalar_lea.hbm %s2882_s0, 128 }
  0x1b   : > { %p1890_p7 = scmp.lt.s32.totalorder %s1883_s17, %s2882_s0  ;;  %p1891_p3 = scmp.lt.s32.totalorder %s1889_s26, %s1884_s19 }
  0x1c   : > { %p1887_p10 = pnand %p1886_p9, %p1885_p5 }
  0x1d   : > { %p1892_p0 = por %p1891_p3, %p1890_p7 }
  0x1e   : > { %p1888_p2 = pneg %p1887_p10 }
  0x20   : > { %p1893_p1 = pnand %p1892_p0, %p1888_p2 }
  0x22   : > { %1896 = shalt.err (!%p1893_p1)
}
  0x23   : > { %s1985_s27 = smov 128   ;;  %s1986_s3 = smov 8  }
  0x24   : > { %1805 = dma.hbm_to_vmem [thread:$0]  (!%p2089_p8), %s131_s14, 1024, %s133_s5, %s121_s16, %s1985_s27, %s1985_s27, %s1986_s3  }
  0x25   : > { %144 = sbr.rel (%p2072_p13) target bundleno = 784 (0x310), region = 28  ;;  %s2110_s4 = sand.u32 (!%p2072_p13), 1, %s1974_s10  }
  0x26   : > { %s1674_s6 = sshll.u32 (!%p2072_p13), %s2110_s4, 6  ;;  %s147_s7 = scalar_lea.sflag (!%p2072_p13), [#allocation5], %s2110_s4 }
  0x27   : > { %s2114_s8 = scalar_lea.vmem (!%p2072_p13), [#allocation4], %s1674_s6 }
  0x2a   : > { %1957 = dma.done.wait (%p2057_p6), %s147_s7, 1024  }
  0x2b   : > { %1959 = vsyncadd (%p2057_p6), %s147_s7, 4294966272 }
  0x2c   : > { %1961 = dma.done.wait (%p40_p4), [#allocation7], 16  }
  0x2d   : > { %1963 = vsyncadd (%p40_p4), [#allocation7], 4294967280 }
  0x2e   : > { %161 = sfence }
  0x2f   : > { %s1676_s23 = sshll.u32 %s2110_s4, 4  ;;  %p2891_p13 = scmp.ne.s32.totalorder %s2033_s13, 0 }
  0x30   : > { %s2125_s28 = scalar_lea.vmem [#allocation9], %s1676_s23 }
  0x31   : > { %181 = sbr.rel (%p2891_p13) target bundleno = 61 (0x3d), region = 40 }
  0x36   : > { %vm182_vm0 = vcmask 179200   ;;  %v1987_v0 = vmov 0.0   ;;  %vm185_vm1 = vcmask 177152  }
  0x37   : > { %183 = vst.msk [vmem:[#allocation2] sm:$0xff] %vm182_vm0, %v1987_v0 }
  0x38   : > { %184 = vst.msk [vmem:[#allocation2 + $0x8] sm:$0xff] %vm182_vm0, %v1987_v0 }
  0x39   : > { %187 = vst.msk [vmem:[#allocation3] sm:$0xff] %vm182_vm0, %v1987_v0 }
  0x3a   : > { %188 = vst.msk [vmem:[#allocation3 + $0x8] sm:$0xff] %vm182_vm0, %v1987_v0 }
  0x3b   : > { %186 = vst.msk [vmem:[#allocation2 + $0x10] sm:$0x3f] %vm185_vm1, %v1987_v0 }
  0x3c   : > { %189 = vst.msk [vmem:[#allocation3 + $0x10] sm:$0x3f] %vm185_vm1, %v1987_v0 }
  0x3d PF: > { %v190_v1 = vld [vmem:[%s2114_s8] sm:$0xff]  ;;  %v1678_v2 = vld [vmem:[%s2114_s8 + $0x10] sm:$0xff]  ;;  %v191_v6 = vld [vmem:[%s2114_s8 + $0x8] sm:$0xff]  ;;  %s1988_s20 = smov 3   ;;  %vm223_vm2 = vcmask 154648   ;;  %s1686_s5 = sld [smem:[#allocation8 + $0x32]] }
  0x3e   : > { %v1680_v3 = vld [vmem:[%s2114_s8 + $0x20] sm:$0xff]  ;;  %v197_v4 = vmax.f32 %v190_v1, %v1678_v2  ;;  %v195_v5 = vadd.f32 %v1678_v2, %v190_v1  ;;  %v1679_v7 = vld [vmem:[%s2114_s8 + $0x18] sm:$0xff]  ;;  %v1682_v8 = vld [vmem:[%s2114_s8 + $0x30] sm:$0xff]  ;;  %s2137_s14 = sld [smem:[#allocation8 + $0x31]]  ;;  %s1989_s24 = smov 127   ;;  %vm1562_vm6 = vcmask 130048  }
  0x3f   : > { %v1681_v9 = vld [vmem:[%s2114_s8 + $0x28] sm:$0xff]  ;;  %v196_v10 = vadd.f32 %v1679_v7, %v191_v6  ;;  %v198_v13 = vmax.f32 %v191_v6, %v1679_v7  ;;  %v1683_v17 = vld [vmem:[%s2114_s8 + $0x38] sm:$0xff]  ;;  %s236_s16 = sld [smem:[#allocation8]]  ;;  %s1990_s26 = smov 126  }
  0x40   : > { %v204_v11 = vmax.f32 %v197_v4, %v1680_v3  ;;  %v202_v12 = vadd.f32 %v1680_v3, %v195_v5  ;;  %s1688_s17 = sld [smem:[#allocation8 + $0x33]]  ;;  %s1991_s29 = smov 125  }
  0x41   : > { %v203_v16 = vadd.f32 %v1681_v9, %v196_v10  ;;  %v205_v19 = vmax.f32 %v198_v13, %v1681_v9  ;;  %s1690_s19 = sld [smem:[#allocation8 + $0x34]]  ;;  %s1992_s3 = smov 124  }
  0x42   : > { %v211_v14 = vmax.f32 %v204_v11, %v1682_v8  ;;  %v209_v15 = vadd.f32 %v1682_v8, %v202_v12  ;;  %s1692_s25 = sld [smem:[#allocation8 + $0x35]]  ;;  %s1993_s7 = smov 123  }
  0x43   : > { %v210_v20 = vadd.f32 %v1683_v17, %v203_v16  ;;  %v212_v21 = vmax.f32 %v205_v19, %v1683_v17  ;;  %v267_v25 = vstv %s1686_s5  ;;  %s1694_s30 = sld [smem:[#allocation8 + $0x36]]  ;;  %s1994_s8 = smov 122  }
  0x44   : > { %228 = vrot.lane.b32.xlu1 %v211_v14, %s1988_s20  ;;  %v213_v18 = vmul.f32 0.25, %v209_v15  ;;  %v247_v26 = vstv %s2137_s14  ;;  %s1696_s27 = sld [smem:[#allocation8 + $0x37]] }
  0x45   : > { %v214_v22 = vmul.f32 0.25, %v210_v20  ;;  %v240_v28 = vstv %s236_s16  ;;  %s1700_s6 = sld [smem:[#allocation8 + $0x39]] }
  0x46   : > { %217 = vrot.lane.b32.xlu0 %v213_v18, %s1988_s20  ;;  %v295_v37 = vstv %s1688_s17  ;;  %s1702_s23 = sld [smem:[#allocation8 + $0x3a]] }
  0x47   : > { %v323_v40 = vstv %s1690_s19  ;;  %s1706_s5 = sld [smem:[#allocation8 + $0x3c]] }
  0x48   : > { %v351_v46 = vstv %s1692_s25  ;;  %s2178_s14 = sld [smem:[#allocation8 + $0x2]] }
  0x49   : > { %v379_v50 = vstv %s1694_s30  ;;  %s1708_s16 = sld [smem:[#allocation8 + $0x3d]] }
  0x4a   : > { %v407_v53 = vstv %s1696_s27  ;;  %s2186_s17 = sld [smem:[#allocation8 + $0x3e]] }
  0x4b   : > { %v451_v56 = vstv %s1700_s6  ;;  %s1689_s19 = sld [smem:[#allocation8 + $0x3]] }
  0x4c   : > { %230 = vrot.lane.b32.xlu1 %v212_v21, %s1988_s20  ;;  %v479_v61 = vstv %s1702_s23  ;;  %s1685_s25 = sld [smem:[#allocation8 + $0x1]] }
  0x4d   : > { %v535_v2 = vstv %s1706_s5  ;;  %s2196_s30 = sld [smem:[#allocation8 + $0x5]] }
  0x4e   : > { %219 = vrot.lane.b32.xlu0 %v214_v22, %s1988_s20  ;;  %s1704_s20 = sld [smem:[#allocation8 + $0x3b]]  ;;  %v282_v6 = vstv %s2178_s14 }
  0x4f   : > { %v563_v7 = vstv %s1708_s16  ;;  %s2206_s27 = sld [smem:[#allocation8 + $0x4]] }
  0x50   : > { %v591_v11 = vstv %s2186_s17  ;;  %s1695_s6 = sld [smem:[#allocation8 + $0x6]] }
  0x51   : > { %v310_v12 = vstv %s1689_s19  ;;  %s2216_s23 = sld [smem:[#allocation8 + $0x9]] }
  0x52   : > { %v254_v16 = vstv %s1685_s25  ;;  %s1703_s5 = sld [smem:[#allocation8 + $0xa]] }
  0x53   : > { %v366_v17 = vstv %s2196_s30  ;;  %s2238_s14 = sld [smem:[#allocation8 + $0xc]] }
  0x54   : > { %v507_v0 = vstv %s1704_s20  ;;  %s2224_s20 = sld [smem:[#allocation8 + $0x8]] }
  0x55   : > { %v338_v21 = vstv %s2206_s27  ;;  %s2248_s16 = sld [smem:[#allocation8 + $0xb]] }
  0x56   : > { %v394_v22 = vstv %s1695_s6  ;;  %s1709_s19 = sld [smem:[#allocation8 + $0xd]] }
  0x57   : > { %s2270_s25 = sld [smem:[#allocation8 + $0xf]] }
  0x58   : > { %s1714_s30 = sld [smem:[#allocation8 + $0x40]] }
  0x59   : > { %s2291_s17 = sld [smem:[#allocation8 + $0x10]] }
  0x5a   : > { %s2307_s27 = sld [smem:[#allocation8 + $0x41]] }
  0x5b   : > { %s1717_s6 = sld [smem:[#allocation8 + $0x11]] }
  0xb6   : > { %v229_v23 = vpop.permute.xlu1 %228 }
  0xb7   : > { %234 = vst.msk [vmem:[#allocation3 + $0x3] sm:$0xff] %vm223_vm2, %v229_v23 }
  0xb8   : > { %v218_v24 = vpop.permute.xlu0 %217 }
  0xb9   : > { %224 = vst.msk [vmem:[#allocation2 + $0x3] sm:$0xff] %vm223_vm2, %v218_v24 }
  0xbe   : > { %v245_v27 = vld [vmem:[#allocation3] sm:$0xff]  ;;  %v231_v29 = vpop.permute.xlu1 %230 }
  0xbf   : > { %235 = vst.msk [vmem:[#allocation3 + $0xb] sm:$0xff] %vm223_vm2, %v231_v29  ;;  %v268_v30 = vmul.f32 %v267_v25, %v245_v27  ;;  %v248_v33 = vmul.f32 %v247_v26, %v245_v27  ;;  %v296_v47 = vmul.f32 %v295_v37, %v245_v27  ;;  %v324_v48 = vmul.f32 %v323_v40, %v245_v27  ;;  %v2164_v55 = vld [vmem:[#allocation3 + $0x1] sm:$0xff] }
  0xc0   : > { %v2143_v31 = vld [vmem:[#allocation2] sm:$0xff]  ;;  %v220_v32 = vpop.permute.xlu0 %219  ;;  %v352_v49 = vmul.f32 %v351_v46, %v245_v27  ;;  %v408_v57 = vmul.f32 %v407_v53, %v245_v27  ;;  %v380_v58 = vmul.f32 %v379_v50, %v245_v27  ;;  %v452_v59 = vmul.f32 %v451_v56, %v2164_v55 }
  0xc1   : > { %v241_v34 = vmul.f32 %v240_v28, %v2143_v31  ;;  %225 = vst.msk [vmem:[#allocation2 + $0xb] sm:$0xff] %vm223_vm2, %v220_v32  ;;  %272 = vrot.lane.b32.xlu0 %v268_v30, %s1989_s24  ;;  %v508_v3 = vmul.f32 %v507_v0, %v2164_v55  ;;  %v480_v4 = vmul.f32 %v479_v61, %v2164_v55  ;;  %v466_v27 = vstv %s2216_s23  ;;  %v2235_v32 = vld [vmem:[#allocation2 + $0x1] sm:$0xff]  ;;  %s2327_s23 = sld [smem:[#allocation8 + $0x42]] }
  0xc2   : > { %v536_v5 = vmul.f32 %v535_v2, %v2164_v55  ;;  %v592_v13 = vmul.f32 %v591_v11, %v2164_v55  ;;  %v564_v14 = vmul.f32 %v563_v7, %v2164_v55  ;;  %v311_v15 = vmul.f32 %v310_v12, %v2143_v31 }
  0xc3   : > { %v2148_v35 = vadd.f32 %v248_v33, %v241_v34  ;;  %v255_v18 = vmul.f32 %v254_v16, %v2143_v31  ;;  %v339_v23 = vmul.f32 %v338_v21, %v2143_v31  ;;  %v283_v29 = vmul.f32 %v282_v6, %v2143_v31 }
  0xc4   : > { %v438_v33 = vstv %s2224_s20  ;;  %v494_v34 = vstv %s1703_s5  ;;  %s2339_s20 = sld [smem:[#allocation8 + $0x12]] }
  0xc5   : > { %s1720_s5 = sld [smem:[#allocation8 + $0x43]] }
  0xc6   : > { %v246_v36 = vld [vmem:[#allocation3 + $0x8] sm:$0xff] }
  0xc7   : > { %v297_v38 = vmul.f32 %v295_v37, %v246_v36  ;;  %v269_v39 = vmul.f32 %v267_v25, %v246_v36  ;;  %v325_v42 = vmul.f32 %v323_v40, %v246_v36  ;;  %v249_v43 = vmul.f32 %v247_v26, %v246_v36  ;;  %v2170_v60 = vld [vmem:[#allocation3 + $0x9] sm:$0xff] }
  0xc8   : > { %v2150_v41 = vld [vmem:[#allocation2 + $0x8] sm:$0xff]  ;;  %v381_v51 = vmul.f32 %v379_v50, %v246_v36  ;;  %v353_v52 = vmul.f32 %v351_v46, %v246_v36  ;;  %v409_v54 = vmul.f32 %v407_v53, %v246_v36  ;;  %v481_v62 = vmul.f32 %v479_v61, %v2170_v60 }
  0xc9   : > { %v242_v44 = vmul.f32 %v240_v28, %v2150_v41  ;;  %302 = vrot.lane.b32.xlu2 %v297_v38, %s1990_s26  ;;  %274 = vrot.lane.b32.xlu1 %v269_v39, %s1989_s24  ;;  %v453_v63 = vmul.f32 %v451_v56, %v2170_v60  ;;  %v509_v1 = vmul.f32 %v507_v0, %v2170_v60  ;;  %v2226_v26 = vld [vmem:[#allocation2 + $0x9] sm:$0xff]  ;;  %v550_v40 = vstv %s2238_s14  ;;  %s2355_s14 = sld [smem:[#allocation8 + $0x13]] }
  0xca   : > { %330 = vrot.lane.b32.xlu0 %v325_v42, %s1991_s29  ;;  %v565_v8 = vmul.f32 %v563_v7, %v2170_v60  ;;  %v537_v9 = vmul.f32 %v535_v2, %v2170_v60  ;;  %v284_v10 = vmul.f32 %v282_v6, %v2150_v41  ;;  %v312_v19 = vmul.f32 %v310_v12, %v2150_v41  ;;  %v2305_v6 = vld [vmem:[#allocation3 + $0xa] sm:$0xff]  ;;  %v2309_v7 = vld [vmem:[#allocation2 + $0xa] sm:$0xff] }
  0xcb   : > { %v2156_v45 = vadd.f32 %v249_v43, %v242_v44  ;;  %v368_v20 = vmul.f32 %v366_v17, %v2150_v41  ;;  %v256_v24 = vmul.f32 %v254_v16, %v2150_v41  ;;  %v395_v25 = vmul.f32 %v394_v22, %v2143_v31 }
  0xcc   : > { %v396_v28 = vmul.f32 %v394_v22, %v2150_v41  ;;  %v468_v30 = vmul.f32 %v466_v27, %v2226_v26  ;;  %v439_v36 = vmul.f32 %v438_v33, %v2235_v32  ;;  %v340_v37 = vmul.f32 %v338_v21, %v2150_v41 }
  0xcd   : > { %v495_v38 = vmul.f32 %v494_v34, %v2235_v32  ;;  %v496_v42 = vmul.f32 %v494_v34, %v2226_v26  ;;  %v367_v43 = vmul.f32 %v366_v17, %v2143_v31  ;;  %v552_v41 = vmul.f32 %v550_v40, %v2226_v26 }
  0xce   : > { %v522_v46 = vstv %s2248_s16  ;;  %v467_v53 = vmul.f32 %v466_v27, %v2235_v32  ;;  %v622_v61 = vstv %s2270_s25  ;;  %v678_v16 = vstv %s1717_s6  ;;  %s2368_s16 = sld [smem:[#allocation8 + $0x44]] }
  0xcf   : > { %v719_v34 = vstv %s1720_s5  ;;  %s2384_s25 = sld [smem:[#allocation8 + $0x45]] }
  0xd0   : > { %s2420_s6 = sld [smem:[#allocation8 + $0x38]] }
  0xd1   : > { %328 = vrot.lane.b32.xlu2 %v324_v48, %s1991_s29  ;;  %300 = vrot.lane.b32.xlu1 %v296_v47, %s1990_s26  ;;  %v578_v47 = vstv %s1709_s19  ;;  %v523_v48 = vmul.f32 %v522_v46, %v2235_v32  ;;  %s1723_s19 = sld [smem:[#allocation8 + $0x14]] }
  0xd2   : > { %356 = vrot.lane.b32.xlu0 %v352_v49, %s1992_s3  ;;  %v440_v49 = vmul.f32 %v438_v33, %v2226_v26  ;;  %v579_v50 = vmul.f32 %v578_v47, %v2235_v32  ;;  %v706_v33 = vstv %s2339_s20  ;;  %s2429_s20 = sld [smem:[#allocation8 + $0x48]] }
  0xd3   : > { %s2433_s5 = sld [smem:[#allocation8 + $0x18]] }
  0xd9   : > { %386 = vrot.lane.b32.xlu2 %v381_v51, %s1993_s7  ;;  %358 = vrot.lane.b32.xlu1 %v353_v52, %s1992_s3  ;;  %v580_v52 = vmul.f32 %v578_v47, %v2226_v26  ;;  %v721_v47 = vmul.f32 %v719_v34, %v2305_v6 }
  0xda   : > { %414 = vrot.lane.b32.xlu0 %v409_v54, %s1994_s8  ;;  %v593_v54 = vmul.f32 %v591_v11, %v2170_v60 }
  0xe1   : > { %412 = vrot.lane.b32.xlu2 %v408_v57, %s1994_s8  ;;  %384 = vrot.lane.b32.xlu1 %v380_v58, %s1993_s7 }
  0xe2   : > { %456 = vrot.lane.b32.xlu0 %v452_v59, %s1989_s24  ;;  %v2286_v59 = vld [vmem:[#allocation2 + $0x2] sm:$0xff] }
  0xe3   : > { %v623_v0 = vmul.f32 %v622_v61, %v2286_v59 }
  0xe9   : > { %486 = vrot.lane.b32.xlu2 %v481_v62, %s1990_s26  ;;  %458 = vrot.lane.b32.xlu1 %v453_v63, %s1989_s24  ;;  %v2289_v62 = vld [vmem:[#allocation3 + $0x2] sm:$0xff]  ;;  %v635_v63 = vstv %s1714_s30  ;;  %s2393_s30 = sld [smem:[#allocation8 + $0x16]] }
  0xea   : > { %514 = vrot.lane.b32.xlu0 %v509_v1, %s1991_s29  ;;  %v524_v1 = vmul.f32 %v522_v46, %v2226_v26  ;;  %v636_v2 = vmul.f32 %v635_v63, %v2289_v62  ;;  %v734_v46 = vstv %s2355_s14  ;;  %s2456_s14 = sld [smem:[#allocation8 + $0x49]] }
  0xf1   : > { %512 = vrot.lane.b32.xlu2 %v508_v3, %s1991_s29  ;;  %484 = vrot.lane.b32.xlu1 %v480_v4, %s1990_s26 }
  0xf2   : > { %540 = vrot.lane.b32.xlu0 %v536_v5, %s1992_s3 }
  0xf9   : > { %570 = vrot.lane.b32.xlu2 %v565_v8, %s1993_s7  ;;  %542 = vrot.lane.b32.xlu1 %v537_v9, %s1992_s3  ;;  %v650_v8 = vstv %s2291_s17  ;;  %v637_v9 = vmul.f32 %v635_v63, %v2305_v6  ;;  %s2395_s17 = sld [smem:[#allocation8 + $0x47]] }
  0xfa   : > { %289 = vrot.lane.b32.xlu0 %v284_v10, %s1990_s26  ;;  %v551_v10 = vmul.f32 %v550_v40, %v2235_v32  ;;  %v652_v11 = vmul.f32 %v650_v8, %v2309_v7 }
 0x101   : > { %596 = vrot.lane.b32.xlu2 %v592_v13, %s1994_s8  ;;  %568 = vrot.lane.b32.xlu1 %v564_v14, %s1993_s7 }
 0x102   : > { %315 = vrot.lane.b32.xlu0 %v311_v15, %s1991_s29  ;;  %v663_v15 = vstv %s2307_s27  ;;  %s2415_s27 = sld [smem:[#allocation8 + $0x17]] }
 0x103   : > { %v664_v17 = vmul.f32 %v663_v15, %v2289_v62 }
 0x109   : > { %259 = vrot.lane.b32.xlu2 %v255_v18, %s1989_s24  ;;  %317 = vrot.lane.b32.xlu1 %v312_v19, %s1991_s29  ;;  %v624_v18 = vmul.f32 %v622_v61, %v2309_v7  ;;  %v679_v19 = vmul.f32 %v678_v16, %v2286_v59  ;;  %v762_v61 = vstv %s1723_s19  ;;  %s2465_s19 = sld [smem:[#allocation8 + $0x4a]] }
 0x10a   : > { %373 = vrot.lane.b32.xlu0 %v368_v20, %s1993_s7 }
 0x111   : > { %343 = vrot.lane.b32.xlu1 %v339_v23, %s1992_s3  ;;  %261 = vrot.lane.b32.xlu2 %v256_v24, %s1989_s24  ;;  %v680_v23 = vmul.f32 %v678_v16, %v2309_v7  ;;  %v691_v24 = vstv %s2327_s23  ;;  %v764_v16 = vmul.f32 %v762_v61, %v2309_v7  ;;  %s2425_s23 = sld [smem:[#allocation8 + $0x7]] }
 0x112   : > { %399 = vrot.lane.b32.xlu0 %v395_v25, %s1994_s8  ;;  %v651_v25 = vmul.f32 %v650_v8, %v2286_v59  ;;  %v693_v27 = vmul.f32 %v691_v24, %v2305_v6  ;;  %v763_v8 = vmul.f32 %v762_v61, %v2286_v59  ;;  %v2431_v61 = vld [vmem:[#allocation2 + $0xb] sm:$0xff] }
 0x119   : > { %401 = vrot.lane.b32.xlu1 %v396_v28, %s1994_s8  ;;  %287 = vrot.lane.b32.xlu2 %v283_v29, %s1990_s26 }
 0x11a   : > { %473 = vrot.lane.b32.xlu0 %v468_v30, %s1990_s26 }
 0x121   : > { %443 = vrot.lane.b32.xlu1 %v439_v36, %s1989_s24  ;;  %345 = vrot.lane.b32.xlu2 %v340_v37, %s1992_s3  ;;  %v707_v36 = vmul.f32 %v706_v33, %v2286_v59  ;;  %v665_v37 = vmul.f32 %v663_v15, %v2305_v6 }
 0x122   : > { %499 = vrot.lane.b32.xlu0 %v495_v38, %s1991_s29  ;;  %v720_v38 = vmul.f32 %v719_v34, %v2289_v62  ;;  %v806_v34 = vstv %s2393_s30  ;;  %s2491_s30 = sld [smem:[#allocation8 + $0x3f]] }
 0x123   : > { %v2246_v39 = vpop.permute.xlu2 %302 }
 0x129   : > { %501 = vrot.lane.b32.xlu1 %v496_v42, %s1991_s29  ;;  %371 = vrot.lane.b32.xlu2 %v367_v43, %s1993_s7 }
 0x12a   : > { %557 = vrot.lane.b32.xlu0 %v552_v41, %s1993_s7 }
 0x12b   : > { %v2257_v44 = vpop.permute.xlu2 %328 }
 0x131   : > { %527 = vrot.lane.b32.xlu1 %v523_v48, %s1992_s3  ;;  %445 = vrot.lane.b32.xlu2 %v440_v49, %s1989_s24  ;;  %v692_v48 = vmul.f32 %v691_v24, %v2289_v62  ;;  %v736_v49 = vmul.f32 %v734_v46, %v2309_v7 }
 0x132   : > { %583 = vrot.lane.b32.xlu0 %v579_v50, %s1994_s8 }
 0x133   : > { %v2266_v31 = vpop.permute.xlu2 %386  ;;  %v2268_v51 = vpop.permute.xlu0 %272 }
 0x139   : > { %585 = vrot.lane.b32.xlu1 %v580_v52, %s1994_s8  ;;  %471 = vrot.lane.b32.xlu2 %v467_v53, %s1990_s26 }
 0x13a   : > { %598 = vrot.lane.b32.xlu0 %v593_v54, %s1994_s8  ;;  %v747_v54 = vstv %s2368_s16  ;;  %s2463_s16 = sld [smem:[#allocation8 + $0x19]] }
 0x13b   : > { %v2280_v56 = vpop.permute.xlu2 %412  ;;  %v2282_v57 = vpop.permute.xlu1 %274 }
 0x13c   : > { %v2284_v58 = vpop.permute.xlu0 %330 }
 0x141   : > { %627 = vrot.lane.b32.xlu1 %v623_v0, %s1989_s24  ;;  %529 = vrot.lane.b32.xlu2 %v524_v1, %s1992_s3  ;;  %v748_v0 = vmul.f32 %v747_v54, %v2289_v62  ;;  %v708_v1 = vmul.f32 %v706_v33, %v2309_v7  ;;  %v2406_v33 = vld [vmem:[#allocation2 + $0x3] sm:$0xff] }
 0x142   : > { %640 = vrot.lane.b32.xlu0 %v636_v2, %s1989_s24 }
 0x143   : > { %v2299_v3 = vpop.permute.xlu2 %486  ;;  %v2301_v4 = vpop.permute.xlu1 %300 }
 0x144   : > { %v2303_v5 = vpop.permute.xlu0 %356 }
 0x149   : > { %642 = vrot.lane.b32.xlu1 %v637_v9, %s1989_s24  ;;  %555 = vrot.lane.b32.xlu2 %v551_v10, %s1993_s7 }
 0x14a   : > { %657 = vrot.lane.b32.xlu0 %v652_v11, %s1990_s26 }
 0x14b   : > { %v2318_v12 = vpop.permute.xlu2 %512  ;;  %v2320_v13 = vpop.permute.xlu1 %358 }
 0x14c   : > { %v2322_v14 = vpop.permute.xlu0 %414 }
 0x151   : > { %668 = vrot.lane.b32.xlu1 %v664_v17, %s1990_s26  ;;  %629 = vrot.lane.b32.xlu2 %v624_v18, %s1989_s24  ;;  %v775_v17 = vstv %s2384_s25  ;;  %s2483_s25 = sld [smem:[#allocation8 + $0x1a]] }
 0x152   : > { %683 = vrot.lane.b32.xlu0 %v679_v19, %s1991_s29  ;;  %v777_v19 = vmul.f32 %v775_v17, %v2305_v6 }
 0x153   : > { %v2333_v20 = vpop.permute.xlu2 %570  ;;  %v2335_v21 = vpop.permute.xlu1 %384 }
 0x154   : > { %v2337_v22 = vpop.permute.xlu0 %456 }
 0x159   : > { %685 = vrot.lane.b32.xlu1 %v680_v23, %s1991_s29  ;;  %655 = vrot.lane.b32.xlu2 %v651_v25, %s1990_s26 }
 0x15a   : > { %698 = vrot.lane.b32.xlu0 %v693_v27, %s1991_s29 }
 0x15b   : > { %v2348_v28 = vpop.permute.xlu2 %596  ;;  %v2350_v29 = vpop.permute.xlu1 %458 }
 0x15c   : > { %v2352_v30 = vpop.permute.xlu0 %514 }
 0x161   : > { %711 = vrot.lane.b32.xlu1 %v707_v36, %s1992_s3  ;;  %670 = vrot.lane.b32.xlu2 %v665_v37, %s1990_s26  ;;  %v2409_v36 = vld [vmem:[#allocation3 + $0x3] sm:$0xff]  ;;  %v819_v37 = vstv %s2395_s17  ;;  %s1711_s17 = sld [smem:[#allocation8 + $0xe]] }
 0x162   : > { %724 = vrot.lane.b32.xlu0 %v720_v38, %s1992_s3 }
 0x163   : > { %v2363_v40 = vpop.permute.xlu1 %484  ;;  %v260_v42 = vpop.permute.xlu2 %259 }
 0x164   : > { %v265_v43 = vadd.f32 %v260_v42, %v2148_v35  ;;  %v2366_v41 = vpop.permute.xlu0 %540  ;;  %v807_v42 = vmul.f32 %v806_v34, %v2406_v33 }
 0x169   : > { %726 = vrot.lane.b32.xlu1 %v721_v47, %s1992_s3  ;;  %696 = vrot.lane.b32.xlu2 %v692_v48, %s1991_s29 }
 0x16a   : > { %741 = vrot.lane.b32.xlu0 %v736_v49, %s1993_s7 }
 0x16b   : > { %v2377_v35 = vpop.permute.xlu1 %542  ;;  %v262_v50 = vpop.permute.xlu2 %261 }
 0x16c   : > { %v266_v52 = vadd.f32 %v262_v50, %v2156_v45  ;;  %v290_v53 = vpop.permute.xlu0 %289  ;;  %v278_v45 = vadd.f32 %v2268_v51, %v265_v43  ;;  %v735_v51 = vmul.f32 %v734_v46, %v2286_v59  ;;  %v749_v43 = vmul.f32 %v747_v54, %v2305_v6  ;;  %v2427_v54 = vld [vmem:[#allocation3 + $0xb] sm:$0xff] }
 0x16d   : > { %v820_v46 = vmul.f32 %v819_v37, %v2409_v36 }
 0x16e   : > { %v279_v63 = vadd.f32 %v2282_v57, %v266_v52 }
 0x170   : > { %v294_v2 = vadd.f32 %v290_v53, %v279_v63  ;;  %v834_v63 = vstv %s2415_s27  ;;  %s2493_s27 = sld [smem:[#allocation8 + $0x4b]] }
 0x171   : > { %752 = vrot.lane.b32.xlu1 %v748_v0, %s1993_s7  ;;  %713 = vrot.lane.b32.xlu2 %v708_v1, %s1992_s3  ;;  %v776_v0 = vmul.f32 %v775_v17, %v2289_v62 }
 0x172   : > { %767 = vrot.lane.b32.xlu0 %v763_v8, %s1994_s8  ;;  %v307_v23 = vadd.f32 %v2246_v39, %v294_v2  ;;  %v836_v2 = vmul.f32 %v834_v63, %v2431_v61 }
 0x173   : > { %v2391_v9 = vpop.permute.xlu1 %568  ;;  %v288_v57 = vpop.permute.xlu2 %287 }
 0x174   : > { %v293_v10 = vadd.f32 %v288_v57, %v278_v45  ;;  %v316_v11 = vpop.permute.xlu0 %315 }
 0x176   : > { %v306_v15 = vadd.f32 %v2301_v4, %v293_v10 }
 0x178   : > { %v321_v18 = vadd.f32 %v316_v11, %v306_v15  ;;  %v431_v11 = vstv %s2420_s6  ;;  %s2495_s6 = sld [smem:[#allocation8 + $0x1b]] }
 0x179   : > { %769 = vrot.lane.b32.xlu1 %v764_v16, %s1994_s8  ;;  %739 = vrot.lane.b32.xlu2 %v735_v51, %s1993_s7  ;;  %v847_v51 = vstv %s2429_s20  ;;  %s2523_s20 = sld [smem:[#allocation8 + $0x1d]] }
 0x17a   : > { %782 = vrot.lane.b32.xlu0 %v777_v19, %s1994_s8  ;;  %v334_v47 = vadd.f32 %v2257_v44, %v321_v18  ;;  %v862_v18 = vstv %s2433_s5  ;;  %s2525_s5 = sld [smem:[#allocation8 + $0x4e]] }
 0x17b   : > { %v318_v24 = vpop.permute.xlu1 %317  ;;  %v346_v25 = vpop.permute.xlu2 %345 }
 0x17c   : > { %v322_v4 = vadd.f32 %v318_v24, %v307_v23  ;;  %v374_v27 = vpop.permute.xlu0 %373 }
 0x17e   : > { %v335_v38 = vadd.f32 %v2284_v58, %v322_v4  ;;  %v808_v4 = vmul.f32 %v806_v34, %v2431_v61 }
 0x180   : > { %v350_v39 = vadd.f32 %v346_v25, %v335_v38  ;;  %v848_v25 = vmul.f32 %v847_v51, %v2409_v36 }
 0x181   : > { %811 = vrot.lane.b32.xlu1 %v807_v42, %s1989_s24  ;;  %754 = vrot.lane.b32.xlu2 %v749_v43, %s1993_s7 }
 0x182   : > { %v363_v58 = vadd.f32 %v2320_v13, %v350_v39  ;;  %824 = vrot.lane.b32.xlu0 %v820_v46, %s1989_s24  ;;  %v821_v13 = vmul.f32 %v819_v37, %v2427_v54  ;;  %v864_v46 = vmul.f32 %v862_v18, %v2431_v61 }
 0x183   : > { %v344_v48 = vpop.permute.xlu1 %343  ;;  %v372_v49 = vpop.permute.xlu2 %371 }
 0x184   : > { %v378_v50 = vadd.f32 %v374_v27, %v363_v58  ;;  %v349_v52 = vadd.f32 %v344_v48, %v334_v47  ;;  %v400_v53 = vpop.permute.xlu0 %399  ;;  %v433_v27 = vmul.f32 %v431_v11, %v2170_v60  ;;  %v875_v47 = vstv %s2456_s14  ;;  %s2542_s14 = sld [smem:[#allocation8 + $0x1e]] }
 0x185   : > { %v835_v58 = vmul.f32 %v834_v63, %v2406_v33  ;;  %v890_v63 = vstv %s2463_s16  ;;  %s2550_s16 = sld [smem:[#allocation8 + $0x4f]] }
 0x186   : > { %v362_v44 = vadd.f32 %v2303_v5, %v349_v52  ;;  %v391_v8 = vadd.f32 %v2266_v31, %v378_v50  ;;  %v424_v5 = vstv %s2425_s23  ;;  %v877_v50 = vmul.f32 %v875_v47, %v2427_v54  ;;  %s2516_s23 = sld [smem:[#allocation8 + $0x4c]] }
 0x187   : > { %v425_v19 = vmul.f32 %v424_v5, %v2235_v32  ;;  %v426_v23 = vmul.f32 %v424_v5, %v2226_v26  ;;  %v863_v32 = vmul.f32 %v862_v18, %v2406_v33 }
 0x188   : > { %v377_v1 = vadd.f32 %v372_v49, %v362_v44 }
 0x189   : > { %826 = vrot.lane.b32.xlu1 %v821_v13, %s1989_s24  ;;  %780 = vrot.lane.b32.xlu2 %v776_v0, %s1994_s8 }
 0x18a   : > { %v390_v45 = vadd.f32 %v2335_v21, %v377_v1  ;;  %841 = vrot.lane.b32.xlu0 %v836_v2, %s1990_s26  ;;  %v432_v21 = vmul.f32 %v431_v11, %v2164_v55  ;;  %v903_v1 = vstv %s2465_s19  ;;  %s2554_s19 = sld [smem:[#allocation8 + $0x1f]] }
 0x18b   : > { %v402_v57 = vpop.permute.xlu1 %401  ;;  %v446_v10 = vpop.permute.xlu2 %445 }
 0x18c   : > { %v405_v15 = vadd.f32 %v400_v53, %v390_v45  ;;  %v406_v16 = vadd.f32 %v402_v57, %v391_v8  ;;  %v474_v17 = vpop.permute.xlu0 %473  ;;  %v891_v8 = vmul.f32 %v890_v63, %v2406_v33  ;;  %v849_v45 = vmul.f32 %v847_v51, %v2427_v54 }
 0x18d   : > { %v876_v51 = vmul.f32 %v875_v47, %v2409_v36 }
 0x18e   : > { %v418_v24 = vadd.f32 %v2280_v56, %v405_v15  ;;  %v419_v31 = vadd.f32 %v2322_v14, %v406_v16 }
 0x190   : > { %v427_v37 = vadd.f32 %v425_v19, %v418_v24  ;;  %v428_v38 = vadd.f32 %v426_v23, %v419_v31 }
 0x191   : > { %852 = vrot.lane.b32.xlu1 %v848_v25, %s1990_s26  ;;  %813 = vrot.lane.b32.xlu2 %v808_v4, %s1989_s24  ;;  %v615_v25 = vstv %s2491_s30  ;;  %s2573_s30 = sld [smem:[#allocation8 + $0x20]] }
 0x192   : > { %v434_v26 = vadd.f32 %v432_v21, %v427_v37  ;;  %v435_v56 = vadd.f32 %v433_v27, %v428_v38  ;;  %867 = vrot.lane.b32.xlu0 %v863_v32, %s1991_s29  ;;  %v931_v38 = vstv %s2493_s27  ;;  %v946_v32 = vstv %s2495_s6  ;;  %s2586_s27 = sld [smem:[#allocation8 + $0x15]] }
 0x193   : > { %v444_v55 = vpop.permute.xlu1 %443  ;;  %v472_v14 = vpop.permute.xlu2 %471  ;;  %s2588_s6 = sld [smem:[#allocation8 + $0x46]] }
 0x194   : > { %v450_v34 = vadd.f32 %v446_v10, %v435_v56  ;;  %v449_v42 = vadd.f32 %v444_v55, %v434_v26  ;;  %v500_v43 = vpop.permute.xlu0 %499 }
 0x196   : > { %v463_v60 = vadd.f32 %v2350_v29, %v450_v34  ;;  %v462_v39 = vadd.f32 %v2337_v22, %v449_v42  ;;  %v892_v34 = vmul.f32 %v890_v63, %v2431_v61  ;;  %v990_v63 = vstv %s2523_s20  ;;  %s2598_s20 = sld [smem:[#allocation8 + $0x52]] }
 0x198   : > { %v478_v48 = vadd.f32 %v474_v17, %v463_v60  ;;  %v477_v49 = vadd.f32 %v472_v14, %v462_v39  ;;  %v932_v14 = vmul.f32 %v931_v38, %v2409_v36 }
 0x199   : > { %869 = vrot.lane.b32.xlu1 %v864_v46, %s1991_s29  ;;  %839 = vrot.lane.b32.xlu2 %v835_v58, %s1990_s26 }
 0x19a   : > { %v491_v52 = vadd.f32 %v2299_v3, %v478_v48  ;;  %v490_v29 = vadd.f32 %v2363_v40, %v477_v49  ;;  %882 = vrot.lane.b32.xlu0 %v877_v50, %s1991_s29  ;;  %v904_v40 = vmul.f32 %v903_v1, %v2409_v36  ;;  %v948_v48 = vmul.f32 %v946_v32, %v2431_v61 }
 0x19b   : > { %v502_v22 = vpop.permute.xlu1 %501  ;;  %v530_v53 = vpop.permute.xlu2 %529  ;;  %v959_v49 = vstv %s2516_s23  ;;  %s2592_s23 = sld [smem:[#allocation8 + $0x21]] }
 0x19c   : > { %v505_v44 = vadd.f32 %v500_v43, %v490_v29  ;;  %v506_v13 = vadd.f32 %v502_v22, %v491_v52  ;;  %v558_v0 = vpop.permute.xlu0 %557  ;;  %v617_v43 = vmul.f32 %v615_v25, %v2305_v6  ;;  %v961_v29 = vmul.f32 %v959_v49, %v2427_v54 }
 0x19e   : > { %v519_v2 = vadd.f32 %v2352_v30, %v506_v13  ;;  %v518_v5 = vadd.f32 %v2318_v12, %v505_v44  ;;  %v905_v12 = vmul.f32 %v903_v1, %v2427_v54  ;;  %v2537_v1 = vld [vmem:[#allocation3 + $0x4] sm:$0xff] }
 0x1a0   : > { %v534_v3 = vadd.f32 %v530_v53, %v519_v2  ;;  %v1003_v2 = vstv %s2525_s5  ;;  %s2601_s5 = sld [smem:[#allocation8 + $0x22]] }
 0x1a1   : > { %895 = vrot.lane.b32.xlu1 %v891_v8, %s1992_s3  ;;  %854 = vrot.lane.b32.xlu2 %v849_v45, %s1990_s26 }
 0x1a2   : > { %v547_v57 = vadd.f32 %v2377_v35, %v534_v3  ;;  %908 = vrot.lane.b32.xlu0 %v904_v40, %s1992_s3  ;;  %v918_v35 = vstv %s2483_s25  ;;  %v933_v3 = vmul.f32 %v931_v38, %v2427_v54  ;;  %s2565_s25 = sld [smem:[#allocation8 + $0x50]] }
 0x1a3   : > { %v528_v30 = vpop.permute.xlu1 %527  ;;  %v556_v10 = vpop.permute.xlu2 %555  ;;  %v920_v19 = vmul.f32 %v918_v35, %v2431_v61  ;;  %v919_v50 = vmul.f32 %v918_v35, %v2406_v33  ;;  %v1018_v35 = vstv %s2542_s14  ;;  %s2615_s14 = sld [smem:[#allocation8 + $0x53]] }
 0x1a4   : > { %v562_v11 = vadd.f32 %v558_v0, %v547_v57  ;;  %v533_v15 = vadd.f32 %v528_v30, %v518_v5  ;;  %v584_v16 = vpop.permute.xlu0 %583  ;;  %v2534_v0 = vld [vmem:[#allocation2 + $0x4] sm:$0xff]  ;;  %v1004_v5 = vmul.f32 %v1003_v2, %v2537_v1 }
 0x1a5   : > { %v991_v45 = vmul.f32 %v990_v63, %v2534_v0 }
 0x1a6   : > { %v546_v17 = vadd.f32 %v2366_v41, %v533_v15  ;;  %v575_v23 = vadd.f32 %v2333_v20, %v562_v11  ;;  %v608_v41 = vstv %s1711_s17  ;;  %v2548_v15 = vld [vmem:[#allocation3 + $0xc] sm:$0xff]  ;;  %s2576_s17 = sld [smem:[#allocation8 + $0x51]] }
 0x1a7   : > { %v609_v26 = vmul.f32 %v608_v41, %v2286_v59  ;;  %v610_v55 = vmul.f32 %v608_v41, %v2309_v7  ;;  %v947_v59 = vmul.f32 %v946_v32, %v2406_v33 }
 0x1a8   : > { %v561_v18 = vadd.f32 %v556_v10, %v546_v17 }
 0x1a9   : > { %910 = vrot.lane.b32.xlu1 %v905_v12, %s1992_s3  ;;  %880 = vrot.lane.b32.xlu2 %v876_v51, %s1991_s29  ;;  %v1005_v12 = vmul.f32 %v1003_v2, %v2548_v15  ;;  %v960_v51 = vmul.f32 %v959_v49, %v2409_v36  ;;  %v1102_v2 = vstv %s2592_s23  ;;  %s2678_s23 = sld [smem:[#allocation8 + $0x58]] }
 0x1aa   : > { %v574_v24 = vadd.f32 %v2391_v9, %v561_v18  ;;  %925 = vrot.lane.b32.xlu0 %v920_v19, %s1993_s7  ;;  %v616_v9 = vmul.f32 %v615_v25, %v2289_v62  ;;  %v1046_v25 = vstv %s2554_s19  ;;  %s2628_s19 = sld [smem:[#allocation8 + $0x55]] }
 0x1ab   : > { %v586_v31 = vpop.permute.xlu1 %585  ;;  %v630_v21 = vpop.permute.xlu2 %629  ;;  %v1047_v32 = vmul.f32 %v1046_v25, %v2534_v0 }
 0x1ac   : > { %v589_v4 = vadd.f32 %v584_v16, %v574_v24  ;;  %v590_v27 = vadd.f32 %v586_v31, %v575_v23  ;;  %v599_v37 = vpop.permute.xlu0 %598  ;;  %v2552_v16 = vld [vmem:[#allocation2 + $0xc] sm:$0xff] }
 0x1ad   : > { %v1020_v19 = vmul.f32 %v1018_v35, %v2552_v16 }
 0x1ae   : > { %v602_v56 = vadd.f32 %v2348_v28, %v589_v4  ;;  %v603_v20 = vadd.f32 %v599_v37, %v590_v27  ;;  %v992_v37 = vmul.f32 %v990_v63, %v2552_v16 }
 0x1b0   : > { %v611_v42 = vadd.f32 %v609_v26, %v602_v56  ;;  %v612_v60 = vadd.f32 %v610_v55, %v603_v20 }
 0x1b1   : > { %936 = vrot.lane.b32.xlu1 %v932_v14, %s1993_s7  ;;  %897 = vrot.lane.b32.xlu2 %v892_v34, %s1992_s3  ;;  %v1048_v34 = vmul.f32 %v1046_v25, %v2552_v16 }
 0x1b2   : > { %v618_v7 = vadd.f32 %v616_v9, %v611_v42  ;;  %v619_v28 = vadd.f32 %v617_v43, %v612_v60  ;;  %951 = vrot.lane.b32.xlu0 %v947_v59, %s1994_s8  ;;  %v1059_v9 = vstv %s2565_s25  ;;  %v1019_v42 = vmul.f32 %v1018_v35, %v2534_v0  ;;  %s2644_s25 = sld [smem:[#allocation8 + $0x25]] }
 0x1b3   : > { %v628_v62 = vpop.permute.xlu1 %627  ;;  %v656_v39 = vpop.permute.xlu2 %655  ;;  %v1061_v60 = vmul.f32 %v1059_v9, %v2548_v15  ;;  %v1115_v35 = vstv %s2598_s20  ;;  %s2688_s20 = sld [smem:[#allocation8 + $0x1c]] }
 0x1b4   : > { %v634_v46 = vadd.f32 %v630_v21, %v619_v28  ;;  %v633_v47 = vadd.f32 %v628_v62, %v618_v7  ;;  %v641_v58 = vpop.permute.xlu0 %640  ;;  %v1031_v21 = vstv %s2550_s16  ;;  %s2625_s16 = sld [smem:[#allocation8 + $0x24]] }
 0x1b5   : > { %v1032_v27 = vmul.f32 %v1031_v21, %v2537_v1 }
 0x1b6   : > { %v646_v6 = vadd.f32 %v641_v58, %v633_v47 }
 0x1b8   : > { %v661_v52 = vadd.f32 %v656_v39, %v646_v6  ;;  %v1074_v39 = vstv %s2573_s30  ;;  %v1033_v6 = vmul.f32 %v1031_v21, %v2548_v15  ;;  %s2652_s30 = sld [smem:[#allocation8 + $0x56]] }
 0x1b9   : > { %953 = vrot.lane.b32.xlu1 %v948_v48, %s1994_s8  ;;  %923 = vrot.lane.b32.xlu2 %v919_v50, %s1993_s7  ;;  %v1075_v58 = vmul.f32 %v1074_v39, %v2534_v0 }
 0x1ba   : > { %966 = vrot.lane.b32.xlu0 %v961_v29, %s1994_s8 }
 0x1bb   : > { %v643_v22 = vpop.permute.xlu1 %642  ;;  %v671_v53 = vpop.permute.xlu2 %670 }
 0x1bc   : > { %v647_v44 = vadd.f32 %v643_v22, %v634_v46  ;;  %v658_v13 = vpop.permute.xlu0 %657  ;;  %v1087_v46 = vstv %s2576_s17  ;;  %s2656_s17 = sld [smem:[#allocation8 + $0x26]] }
 0x1bd   : > { %v1088_v49 = vmul.f32 %v1087_v46, %v2537_v1  ;;  %v1089_v63 = vmul.f32 %v1087_v46, %v2548_v15 }
 0x1be   : > { %v662_v8 = vadd.f32 %v658_v13, %v647_v44  ;;  %v799_v13 = vstv %s2588_s6  ;;  %s2675_s6 = sld [smem:[#allocation8 + $0x27]] }
 0x1c0   : > { %v675_v40 = vadd.f32 %v671_v53, %v662_v8  ;;  %v792_v53 = vstv %s2586_s27  ;;  %v1060_v8 = vmul.f32 %v1059_v9, %v2537_v1  ;;  %s2667_s27 = sld [smem:[#allocation8 + $0x57]] }
 0x1c1   : > { %995 = vrot.lane.b32.xlu1 %v991_v45, %s1989_s24  ;;  %938 = vrot.lane.b32.xlu2 %v933_v3, %s1993_s7  ;;  %v793_v45 = vmul.f32 %v792_v53, %v2406_v33  ;;  %v794_v33 = vmul.f32 %v792_v53, %v2431_v61 }
 0x1c2   : > { %1008 = vrot.lane.b32.xlu0 %v1004_v5, %s1989_s24  ;;  %v800_v5 = vmul.f32 %v799_v13, %v2409_v36  ;;  %v1076_v36 = vmul.f32 %v1074_v39, %v2552_v16 }
 0x1c3   : > { %v669_v57 = vpop.permute.xlu1 %668  ;;  %v697_v30 = vpop.permute.xlu2 %696 }
 0x1c4   : > { %v674_v10 = vadd.f32 %v669_v57, %v661_v52  ;;  %v684_v11 = vpop.permute.xlu0 %683 }
 0x1c6   : > { %v689_v17 = vadd.f32 %v684_v11, %v674_v10 }
 0x1c8   : > { %v702_v18 = vadd.f32 %v697_v30, %v689_v17 }
 0x1c9   : > { %1010 = vrot.lane.b32.xlu1 %v1005_v12, %s1989_s24  ;;  %964 = vrot.lane.b32.xlu2 %v960_v51, %s1994_s8  ;;  %v1130_v51 = vstv %s2601_s5  ;;  %s2690_s5 = sld [smem:[#allocation8 + $0x4d]] }
 0x1ca   : > { %1025 = vrot.lane.b32.xlu0 %v1020_v19, %s1990_s26  ;;  %v1116_v19 = vmul.f32 %v1115_v35, %v2537_v1 }
 0x1cb   : > { %v686_v23 = vpop.permute.xlu1 %685  ;;  %v714_v24 = vpop.permute.xlu2 %713 }
 0x1cc   : > { %v690_v41 = vadd.f32 %v686_v23, %v675_v40  ;;  %v699_v31 = vpop.permute.xlu0 %698  ;;  %v1104_v40 = vmul.f32 %v1102_v2, %v2552_v16  ;;  %v801_v23 = vmul.f32 %v799_v13, %v2427_v54 }
 0x1ce   : > { %v703_v4 = vadd.f32 %v699_v31, %v690_v41  ;;  %v1131_v41 = vmul.f32 %v1130_v51, %v2534_v0 }
 0x1d0   : > { %v718_v38 = vadd.f32 %v714_v24, %v703_v4 }
 0x1d1   : > { %1036 = vrot.lane.b32.xlu1 %v1032_v27, %s1990_s26  ;;  %997 = vrot.lane.b32.xlu2 %v992_v37, %s1989_s24  ;;  %v1143_v37 = vstv %s2615_s14  ;;  %s2694_s14 = sld [smem:[#allocation8 + $0x28]] }
 0x1d2   : > { %1051 = vrot.lane.b32.xlu0 %v1047_v32, %s1991_s29  ;;  %v1103_v32 = vmul.f32 %v1102_v2, %v2534_v0 }
 0x1d3   : > { %v712_v26 = vpop.permute.xlu1 %711  ;;  %v740_v56 = vpop.permute.xlu2 %739 }
 0x1d4   : > { %v717_v55 = vadd.f32 %v712_v26, %v702_v18  ;;  %v725_v20 = vpop.permute.xlu0 %724 }
 0x1d6   : > { %v730_v14 = vadd.f32 %v725_v20, %v717_v55 }
 0x1d8   : > { %v745_v43 = vadd.f32 %v740_v56, %v730_v14  ;;  %v1145_v56 = vmul.f32 %v1143_v37, %v2548_v15 }
 0x1d9   : > { %1053 = vrot.lane.b32.xlu1 %v1048_v34, %s1991_s29  ;;  %1023 = vrot.lane.b32.xlu2 %v1019_v42, %s1990_s26  ;;  %v2636_v34 = vld [vmem:[#allocation2 + $0x5] sm:$0xff]  ;;  %v1174_v42 = vstv %s2625_s16  ;;  %s2700_s16 = sld [smem:[#allocation8 + $0x59]] }
 0x1da   : > { %1066 = vrot.lane.b32.xlu0 %v1061_v60, %s1991_s29  ;;  %v1187_v60 = vstv %s2628_s19  ;;  %s2703_s19 = sld [smem:[#allocation8 + $0x29]] }
 0x1db   : > { %v727_v59 = vpop.permute.xlu1 %726  ;;  %v755_v7 = vpop.permute.xlu2 %754 }
 0x1dc   : > { %v731_v28 = vadd.f32 %v727_v59, %v718_v38  ;;  %v742_v62 = vpop.permute.xlu0 %741  ;;  %v1132_v38 = vmul.f32 %v1130_v51, %v2552_v16  ;;  %v1243_v51 = vstv %s2667_s27  ;;  %s2746_s27 = sld [smem:[#allocation8 + $0x2c]] }
 0x1de   : > { %v746_v47 = vadd.f32 %v742_v62, %v731_v28  ;;  %v1117_v28 = vmul.f32 %v1115_v35, %v2548_v15 }
 0x1e0   : > { %v759_v48 = vadd.f32 %v755_v7, %v746_v47  ;;  %v1175_v7 = vmul.f32 %v1174_v42, %v2636_v34 }
 0x1e1   : > { %1079 = vrot.lane.b32.xlu1 %v1075_v58, %s1992_s3  ;;  %1038 = vrot.lane.b32.xlu2 %v1033_v6, %s1990_s26 }
 0x1e2   : > { %1092 = vrot.lane.b32.xlu0 %v1088_v49, %s1992_s3  ;;  %v2654_v49 = vld [vmem:[#allocation2 + $0xd] sm:$0xff] }
 0x1e3   : > { %v753_v50 = vpop.permute.xlu1 %752  ;;  %v781_v52 = vpop.permute.xlu2 %780 }
 0x1e4   : > { %v758_v29 = vadd.f32 %v753_v50, %v745_v43  ;;  %v768_v22 = vpop.permute.xlu0 %767  ;;  %v2639_v43 = vld [vmem:[#allocation3 + $0x5] sm:$0xff] }
 0x1e5   : > { %v1188_v39 = vmul.f32 %v1187_v60, %v2639_v43 }
 0x1e6   : > { %v773_v44 = vadd.f32 %v768_v22, %v758_v29  ;;  %v1202_v29 = vstv %s2644_s25  ;;  %v1144_v22 = vmul.f32 %v1143_v37, %v2537_v1  ;;  %s2717_s25 = sld [smem:[#allocation8 + $0x5a]] }
 0x1e7   : > { %v1204_v53 = vmul.f32 %v1202_v29, %v2654_v49 }
 0x1e8   : > { %v786_v3 = vadd.f32 %v781_v52, %v773_v44 }
 0x1e9   : > { %1094 = vrot.lane.b32.xlu1 %v1089_v63, %s1992_s3  ;;  %1064 = vrot.lane.b32.xlu2 %v1060_v8, %s1991_s29 }
 0x1ea   : > { %v795_v57 = vadd.f32 %v793_v45, %v786_v3  ;;  %1109 = vrot.lane.b32.xlu0 %v1104_v40, %s1993_s7  ;;  %v1215_v45 = vstv %s2652_s30  ;;  %v1230_v3 = vstv %s2656_s17  ;;  %s2727_s30 = sld [smem:[#allocation8 + $0x2b]] }
 0x1eb   : > { %v770_v30 = vpop.permute.xlu1 %769  ;;  %v814_v10 = vpop.permute.xlu2 %813  ;;  %s2730_s17 = sld [smem:[#allocation8 + $0x5c]] }
 0x1ec   : > { %v802_v11 = vadd.f32 %v800_v5, %v795_v57  ;;  %v774_v17 = vadd.f32 %v770_v30, %v759_v48  ;;  %v783_v12 = vpop.permute.xlu0 %782  ;;  %v2650_v48 = vld [vmem:[#allocation3 + $0xd] sm:$0xff]  ;;  %v1216_v5 = vmul.f32 %v1215_v45, %v2639_v43  ;;  %v1176_v57 = vmul.f32 %v1174_v42, %v2654_v49 }
 0x1ed   : > { %v1189_v52 = vmul.f32 %v1187_v60, %v2650_v48  ;;  %v1231_v30 = vmul.f32 %v1230_v3, %v2636_v34  ;;  %v1217_v37 = vmul.f32 %v1215_v45, %v2650_v48  ;;  %v1286_v42 = vstv %s2694_s14  ;;  %s2780_s14 = sld [smem:[#allocation8 + $0x5f]] }
 0x1ee   : > { %v787_v18 = vadd.f32 %v783_v12, %v774_v17  ;;  %v1244_v60 = vmul.f32 %v1243_v51, %v2639_v43 }
 0x1f0   : > { %v796_v24 = vadd.f32 %v794_v33, %v787_v18  ;;  %v1232_v18 = vmul.f32 %v1230_v3, %v2654_v49 }
 0x1f1   : > { %1120 = vrot.lane.b32.xlu1 %v1116_v19, %s1993_s7  ;;  %1081 = vrot.lane.b32.xlu2 %v1076_v36, %s1992_s3  ;;  %v1203_v19 = vmul.f32 %v1202_v29, %v2636_v34  ;;  %v1245_v36 = vmul.f32 %v1243_v51, %v2650_v48 }
 0x1f2   : > { %v803_v31 = vadd.f32 %v801_v23, %v796_v24  ;;  %1135 = vrot.lane.b32.xlu0 %v1131_v41, %s1994_s8 }
 0x1f3   : > { %v812_v21 = vpop.permute.xlu1 %811  ;;  %v840_v61 = vpop.permute.xlu2 %839 }
 0x1f4   : > { %v818_v25 = vadd.f32 %v814_v10, %v803_v31  ;;  %v817_v4 = vadd.f32 %v812_v21, %v802_v11  ;;  %v825_v27 = vpop.permute.xlu0 %824 }
 0x1f6   : > { %v830_v54 = vadd.f32 %v825_v27, %v817_v4 }
 0x1f8   : > { %v845_v26 = vadd.f32 %v840_v61, %v830_v54  ;;  %v1258_v61 = vstv %s2675_s6  ;;  %s2754_s6 = sld [smem:[#allocation8 + $0x5d]] }
 0x1f9   : > { %1137 = vrot.lane.b32.xlu1 %v1132_v38, %s1994_s8  ;;  %1107 = vrot.lane.b32.xlu2 %v1103_v32, %s1993_s7  ;;  %v1259_v27 = vmul.f32 %v1258_v61, %v2636_v34 }
 0x1fa   : > { %1150 = vrot.lane.b32.xlu0 %v1145_v56, %s1994_s8 }
 0x1fb   : > { %v827_v55 = vpop.permute.xlu1 %826  ;;  %v855_v20 = vpop.permute.xlu2 %854 }
 0x1fc   : > { %v831_v9 = vadd.f32 %v827_v55, %v818_v25  ;;  %v842_v14 = vpop.permute.xlu0 %841  ;;  %v1271_v25 = vstv %s2678_s23  ;;  %s2758_s23 = sld [smem:[#allocation8 + $0x2d]] }
 0x1fd   : > { %v1272_v54 = vmul.f32 %v1271_v25, %v2639_v43 }
 0x1fe   : > { %v846_v59 = vadd.f32 %v842_v14, %v831_v9  ;;  %v1273_v14 = vmul.f32 %v1271_v25, %v2650_v48 }
 0x200   : > { %v859_v62 = vadd.f32 %v855_v20, %v846_v59  ;;  %v976_v20 = vstv %s2688_s20  ;;  %v983_v59 = vstv %s2690_s5  ;;  %s2769_s20 = sld [smem:[#allocation8 + $0x5e]] }
 0x201   : > { %1179 = vrot.lane.b32.xlu1 %v1175_v7, %s1989_s24  ;;  %1122 = vrot.lane.b32.xlu2 %v1117_v28, %s1993_s7  ;;  %v1288_v28 = vmul.f32 %v1286_v42, %v2654_v49  ;;  %s2777_s5 = sld [smem:[#allocation8 + $0x2e]] }
 0x202   : > { %1192 = vrot.lane.b32.xlu0 %v1188_v39, %s1989_s24  ;;  %v984_v39 = vmul.f32 %v983_v59, %v2537_v1 }
 0x203   : > { %v853_v46 = vpop.permute.xlu1 %852  ;;  %v881_v47 = vpop.permute.xlu2 %880 }
 0x204   : > { %v858_v58 = vadd.f32 %v853_v46, %v845_v26  ;;  %v868_v6 = vpop.permute.xlu0 %867 }
 0x206   : > { %v873_v50 = vadd.f32 %v868_v6, %v858_v58 }
 0x208   : > { %v886_v44 = vadd.f32 %v881_v47, %v873_v50 }
 0x209   : > { %1194 = vrot.lane.b32.xlu1 %v1189_v52, %s1989_s24  ;;  %1148 = vrot.lane.b32.xlu2 %v1144_v22, %s1994_s8  ;;  %v1299_v52 = vstv %s2700_s16  ;;  %v1314_v22 = vstv %s2703_s19  ;;  %s2792_s16 = sld [smem:[#allocation8 + $0x2f]] }
 0x20a   : > { %1209 = vrot.lane.b32.xlu0 %v1204_v53, %s1990_s26  ;;  %v1315_v1 = vmul.f32 %v1314_v22, %v2636_v34  ;;  %s2796_s19 = sld [smem:[#allocation8 + $0x54]] }
 0x20b   : > { %v870_v13 = vpop.permute.xlu1 %869  ;;  %v898_v63 = vpop.permute.xlu2 %897 }
 0x20c   : > { %v874_v2 = vadd.f32 %v870_v13, %v859_v62  ;;  %v883_v8 = vpop.permute.xlu0 %882  ;;  %v977_v62 = vmul.f32 %v976_v20, %v2534_v0  ;;  %v978_v0 = vmul.f32 %v976_v20, %v2552_v16  ;;  %v1260_v13 = vmul.f32 %v1258_v61, %v2654_v49 }
 0x20e   : > { %v887_v40 = vadd.f32 %v883_v8, %v874_v2  ;;  %v985_v2 = vmul.f32 %v983_v59, %v2548_v15 }
 0x210   : > { %v902_v10 = vadd.f32 %v898_v63, %v887_v40 }
 0x211   : > { %1220 = vrot.lane.b32.xlu1 %v1216_v5, %s1990_s26  ;;  %1181 = vrot.lane.b32.xlu2 %v1176_v57, %s1989_s24  ;;  %v1327_v57 = vstv %s2717_s25  ;;  %s2802_s25 = sld [smem:[#allocation8 + $0x60]] }
 0x212   : > { %1235 = vrot.lane.b32.xlu0 %v1231_v30, %s1991_s29  ;;  %v1316_v30 = vmul.f32 %v1314_v22, %v2654_v49  ;;  %v1427_v22 = vstv %s2769_s20 }
 0x213   : > { %v896_v11 = vpop.permute.xlu1 %895  ;;  %v924_v17 = vpop.permute.xlu2 %923 }
 0x214   : > { %v901_v12 = vadd.f32 %v896_v11, %v886_v44  ;;  %v909_v35 = vpop.permute.xlu0 %908  ;;  %v1300_v44 = vmul.f32 %v1299_v52, %v2639_v43  ;;  %v1329_v11 = vmul.f32 %v1327_v57, %v2650_v48 }
 0x216   : > { %v914_v33 = vadd.f32 %v909_v35, %v901_v12 }
 0x218   : > { %v929_v23 = vadd.f32 %v924_v17, %v914_v33 }
 0x219   : > { %1237 = vrot.lane.b32.xlu1 %v1232_v18, %s1991_s29  ;;  %1207 = vrot.lane.b32.xlu2 %v1203_v19, %s1990_s26  ;;  %v2738_v18 = vld [vmem:[#allocation2 + $0x6] sm:$0xff]  ;;  %v1358_v19 = vstv %s2727_s30  ;;  %s2805_s30 = sld [smem:[#allocation8 + $0x30]] }
 0x21a   : > { %1250 = vrot.lane.b32.xlu0 %v1245_v36, %s1991_s29  ;;  %v2741_v36 = vld [vmem:[#allocation3 + $0x6] sm:$0xff] }
 0x21b   : > { %v911_v24 = vpop.permute.xlu1 %910  ;;  %v939_v41 = vpop.permute.xlu2 %938 }
 0x21c   : > { %v915_v31 = vadd.f32 %v911_v24, %v902_v10  ;;  %v926_v21 = vpop.permute.xlu0 %925  ;;  %v1287_v10 = vmul.f32 %v1286_v42, %v2636_v34 }
 0x21e   : > { %v930_v4 = vadd.f32 %v926_v21, %v915_v31  ;;  %v1301_v31 = vmul.f32 %v1299_v52, %v2650_v48 }
 0x220   : > { %v943_v38 = vadd.f32 %v939_v41, %v930_v4  ;;  %v1359_v41 = vmul.f32 %v1358_v19, %v2738_v18 }
 0x221   : > { %1263 = vrot.lane.b32.xlu1 %v1259_v27, %s1992_s3  ;;  %1222 = vrot.lane.b32.xlu2 %v1217_v37, %s1990_s26 }
 0x222   : > { %1276 = vrot.lane.b32.xlu0 %v1272_v54, %s1992_s3  ;;  %v2752_v54 = vld [vmem:[#allocation3 + $0xe] sm:$0xff] }
 0x223   : > { %v937_v32 = vpop.permute.xlu1 %936  ;;  %v965_v26 = vpop.permute.xlu2 %964 }
 0x224   : > { %v942_v56 = vadd.f32 %v937_v32, %v929_v23  ;;  %v952_v55 = vpop.permute.xlu0 %951  ;;  %v1371_v23 = vstv %s2730_s17 }
 0x225   : > { %v1372_v21 = vmul.f32 %v1371_v23, %v2741_v36 }
 0x226   : > { %v957_v9 = vadd.f32 %v952_v55, %v942_v56  ;;  %v1328_v56 = vmul.f32 %v1327_v57, %v2639_v43  ;;  %v1386_v55 = vstv %s2746_s27 }
 0x228   : > { %v970_v7 = vadd.f32 %v965_v26, %v957_v9  ;;  %v1373_v26 = vmul.f32 %v1371_v23, %v2752_v54  ;;  %v1470_v23 = vstv %s2792_s16  ;;  %s1932_s16 = scalar_lea.hbm %s2884_s2, 32 }
 0x229   : > { %1278 = vrot.lane.b32.xlu1 %v1273_v14, %s1992_s3  ;;  %1248 = vrot.lane.b32.xlu2 %v1244_v60, %s1991_s29 }
 0x22a   : > { %1293 = vrot.lane.b32.xlu0 %v1288_v28, %s1993_s7  ;;  %v979_v46 = vadd.f32 %v977_v62, %v970_v7  ;;  %v1399_v7 = vstv %s2754_s6  ;;  %v1414_v28 = vstv %s2758_s23  ;;  %s1566_s23 = scalar_lea.sflag [#allocation6], %s2110_s4 }
 0x22b   : > { %v954_v47 = vpop.permute.xlu1 %953  ;;  %v998_v58 = vpop.permute.xlu2 %997  ;;  %v1401_v57 = vmul.f32 %v1399_v7, %v2752_v54 }
 0x22c   : > { %v958_v6 = vadd.f32 %v954_v47, %v943_v38  ;;  %v967_v50 = vpop.permute.xlu0 %966  ;;  %v986_v29 = vadd.f32 %v984_v39, %v979_v46  ;;  %v2756_v38 = vld [vmem:[#allocation2 + $0xe] sm:$0xff]  ;;  %v1400_v39 = vmul.f32 %v1399_v7, %v2741_v36  ;;  %v1415_v47 = vmul.f32 %v1414_v28, %v2738_v18 }
 0x22d   : > { %v1388_v20 = vmul.f32 %v1386_v55, %v2756_v38  ;;  %v1360_v46 = vmul.f32 %v1358_v19, %v2756_v38  ;;  %v1428_v19 = vmul.f32 %v1427_v22, %v2741_v36 }
 0x22e   : > { %v971_v53 = vadd.f32 %v967_v50, %v958_v6 }
 0x230   : > { %v980_v63 = vadd.f32 %v978_v0, %v971_v53  ;;  %v1416_v53 = vmul.f32 %v1414_v28, %v2756_v38 }
 0x231   : > { %1304 = vrot.lane.b32.xlu1 %v1300_v44, %s1993_s7  ;;  %1265 = vrot.lane.b32.xlu2 %v1260_v13, %s1992_s3  ;;  %v1387_v44 = vmul.f32 %v1386_v55, %v2738_v18  ;;  %v1429_v13 = vmul.f32 %v1427_v22, %v2752_v54  ;;  %v1498_v55 = vstv %s2805_s30 }
 0x232   : > { %1319 = vrot.lane.b32.xlu0 %v1315_v1, %s1994_s8  ;;  %v987_v8 = vadd.f32 %v985_v2, %v980_v63 }
 0x233   : > { %v996_v45 = vpop.permute.xlu1 %995  ;;  %v1024_v16 = vpop.permute.xlu2 %1023 }
 0x234   : > { %v1001_v3 = vadd.f32 %v996_v45, %v986_v29  ;;  %v1009_v40 = vpop.permute.xlu0 %1008  ;;  %v1002_v5 = vadd.f32 %v998_v58, %v987_v8 }
 0x236   : > { %v1014_v15 = vadd.f32 %v1009_v40, %v1001_v3  ;;  %v1455_v3 = vstv %s2780_s14 }
 0x238   : > { %v1029_v17 = vadd.f32 %v1024_v16, %v1014_v15  ;;  %v1442_v16 = vstv %s2777_s5  ;;  %v1456_v15 = vmul.f32 %v1455_v3, %v2741_v36 }
 0x239   : > { %1321 = vrot.lane.b32.xlu1 %v1316_v30, %s1994_s8  ;;  %1291 = vrot.lane.b32.xlu2 %v1287_v10, %s1993_s7 }
 0x23a   : > { %1334 = vrot.lane.b32.xlu0 %v1329_v11, %s1994_s8 }
 0x23b   : > { %v1011_v12 = vpop.permute.xlu1 %1010  ;;  %v1039_v35 = vpop.permute.xlu2 %1038 }
 0x23c   : > { %v1015_v51 = vadd.f32 %v1011_v12, %v1002_v5  ;;  %v1026_v33 = vpop.permute.xlu0 %1025  ;;  %v1443_v5 = vmul.f32 %v1442_v16, %v2738_v18 }
 0x23e   : > { %v1030_v24 = vadd.f32 %v1026_v33, %v1015_v51  ;;  %v1457_v33 = vmul.f32 %v1455_v3, %v2752_v54 }
 0x240   : > { %v1043_v61 = vadd.f32 %v1039_v35, %v1030_v24  ;;  %v1167_v24 = vstv %s2796_s19 }
 0x241   : > { %1363 = vrot.lane.b32.xlu1 %v1359_v41, %s1989_s24  ;;  %1306 = vrot.lane.b32.xlu2 %v1301_v31, %s1993_s7  ;;  %v1472_v31 = vmul.f32 %v1470_v23, %v2756_v38 }
 0x242   : > { %1376 = vrot.lane.b32.xlu0 %v1372_v21, %s1989_s24 }
 0x243   : > { %v1037_v25 = vpop.permute.xlu1 %1036  ;;  %v1065_v4 = vpop.permute.xlu2 %1064 }
 0x244   : > { %v1042_v27 = vadd.f32 %v1037_v25, %v1029_v17  ;;  %v1052_v37 = vpop.permute.xlu0 %1051 }
 0x246   : > { %v1057_v32 = vadd.f32 %v1052_v37, %v1042_v27 }
 0x248   : > { %v1070_v9 = vadd.f32 %v1065_v4, %v1057_v32 }
 0x249   : > { %1378 = vrot.lane.b32.xlu1 %v1373_v26, %s1989_s24  ;;  %1332 = vrot.lane.b32.xlu2 %v1328_v56, %s1994_s8  ;;  %v1483_v26 = vstv %s2802_s25 }
 0x24a   : > { %1393 = vrot.lane.b32.xlu0 %v1388_v20, %s1990_s26 }
 0x24b   : > { %v1054_v14 = vpop.permute.xlu1 %1053  ;;  %v1082_v42 = vpop.permute.xlu2 %1081 }
 0x24c   : > { %v1058_v60 = vadd.f32 %v1054_v14, %v1043_v61  ;;  %v1067_v59 = vpop.permute.xlu0 %1066  ;;  %v1168_v61 = vmul.f32 %v1167_v24, %v2639_v43  ;;  %v1444_v14 = vmul.f32 %v1442_v16, %v2756_v38  ;;  %v1499_v43 = vmul.f32 %v1498_v55, %v2738_v18 }
 0x24e   : > { %v1071_v62 = vadd.f32 %v1067_v59, %v1058_v60  ;;  %v1169_v60 = vmul.f32 %v1167_v24, %v2650_v48 }
 0x250   : > { %v1086_v58 = vadd.f32 %v1082_v42, %v1071_v62 }
 0x251   : > { %1404 = vrot.lane.b32.xlu1 %v1400_v39, %s1990_s26  ;;  %1365 = vrot.lane.b32.xlu2 %v1360_v46, %s1989_s24  ;;  %s2790_s24 = sld [smem:[#allocation8 + $0x23]] }
 0x252   : > { %1419 = vrot.lane.b32.xlu0 %v1415_v47, %s1991_s29 }
 0x253   : > { %v1080_v6 = vpop.permute.xlu1 %1079  ;;  %v1108_v50 = vpop.permute.xlu2 %1107 }
 0x254   : > { %v1085_v52 = vadd.f32 %v1080_v6, %v1070_v9  ;;  %v1093_v29 = vpop.permute.xlu0 %1092  ;;  %v1484_v9 = vmul.f32 %v1483_v26, %v2741_v36  ;;  %v1471_v6 = vmul.f32 %v1470_v23, %v2738_v18 }
 0x256   : > { %v1098_v0 = vadd.f32 %v1093_v29, %v1085_v52 }
 0x257   : > { %v1160_v35 = vstv %s2790_s24 }
 0x258   : > { %v1113_v63 = vadd.f32 %v1108_v50, %v1098_v0  ;;  %v1161_v21 = vmul.f32 %v1160_v35, %v2636_v34  ;;  %v1162_v34 = vmul.f32 %v1160_v35, %v2654_v49 }
 0x259   : > { %1421 = vrot.lane.b32.xlu1 %v1416_v53, %s1991_s29  ;;  %1391 = vrot.lane.b32.xlu2 %v1387_v44, %s1990_s26  ;;  %v1485_v44 = vmul.f32 %v1483_v26, %v2752_v54 }
 0x25a   : > { %1434 = vrot.lane.b32.xlu0 %v1429_v13, %s1991_s29 }
 0x25b   : > { %v1095_v1 = vpop.permute.xlu1 %1094  ;;  %v1123_v2 = vpop.permute.xlu2 %1122 }
 0x25c   : > { %v1099_v8 = vadd.f32 %v1095_v1, %v1086_v58  ;;  %v1110_v45 = vpop.permute.xlu0 %1109  ;;  %v1500_v58 = vmul.f32 %v1498_v55, %v2756_v38 }
 0x25e   : > { %v1114_v40 = vadd.f32 %v1110_v45, %v1099_v8 }
 0x260   : > { %v1127_v30 = vadd.f32 %v1123_v2, %v1114_v40 }
 0x261   : > { %1447 = vrot.lane.b32.xlu1 %v1443_v5, %s1992_s3  ;;  %1406 = vrot.lane.b32.xlu2 %v1401_v57, %s1990_s26  ;;  %s2819_s26 = sld [smem:[#allocation8 + $0x61]] }
 0x262   : > { %1460 = vrot.lane.b32.xlu0 %v1456_v15, %s1992_s3 }
 0x263   : > { %v1121_v10 = vpop.permute.xlu1 %1120  ;;  %v1149_v11 = vpop.permute.xlu2 %1148 }
 0x264   : > { %v1126_v17 = vadd.f32 %v1121_v10, %v1113_v63  ;;  %v1136_v12 = vpop.permute.xlu0 %1135 }
 0x266   : > { %v1141_v51 = vadd.f32 %v1136_v12, %v1126_v17 }
 0x267   : > { %v1511_v46 = vstv %s2819_s26 }
 0x268   : > { %v1154_v41 = vadd.f32 %v1149_v11, %v1141_v51  ;;  %v1513_v48 = vmul.f32 %v1511_v46, %v2752_v54  ;;  %v1512_v8 = vmul.f32 %v1511_v46, %v2741_v36 }
 0x269   : > { %1462 = vrot.lane.b32.xlu1 %v1457_v33, %s1992_s3  ;;  %1432 = vrot.lane.b32.xlu2 %v1428_v19, %s1991_s29  ;;  %s1767_s29 = sld [smem:[#allocation8 + $0x2a]] }
 0x26a   : > { %1477 = vrot.lane.b32.xlu0 %v1472_v31, %s1993_s7  ;;  %v1163_v25 = vadd.f32 %v1161_v21, %v1154_v41 }
 0x26b   : > { %v1138_v4 = vpop.permute.xlu1 %1137  ;;  %v1182_v27 = vpop.permute.xlu2 %1181 }
 0x26c   : > { %v1142_v37 = vadd.f32 %v1138_v4, %v1127_v30  ;;  %v1151_v32 = vpop.permute.xlu0 %1150  ;;  %v1170_v56 = vadd.f32 %v1168_v61, %v1163_v25 }
 0x26e   : > { %v1155_v20 = vadd.f32 %v1151_v32, %v1142_v37 }
 0x26f   : > { %v1344_v4 = vstv %s1767_s29 }
 0x270   : > { %v1164_v42 = vadd.f32 %v1162_v34, %v1155_v20 }
 0x271   : > { %1488 = vrot.lane.b32.xlu1 %v1484_v9, %s1993_s7  ;;  %1449 = vrot.lane.b32.xlu2 %v1444_v14, %s1992_s3  ;;  %s1768_s3 = sld [smem:[#allocation8 + $0x5b]] }
 0x272   : > { %1503 = vrot.lane.b32.xlu0 %v1499_v43, %s1994_s8  ;;  %v1171_v59 = vadd.f32 %v1169_v60, %v1164_v42 }
 0x273   : > { %v1180_v7 = vpop.permute.xlu1 %1179  ;;  %v1208_v49 = vpop.permute.xlu2 %1207 }
 0x274   : > { %v1185_v28 = vadd.f32 %v1180_v7, %v1170_v56  ;;  %v1193_v62 = vpop.permute.xlu0 %1192  ;;  %v1186_v39 = vadd.f32 %v1182_v27, %v1171_v59  ;;  %v1345_v56 = vmul.f32 %v1344_v4, %v2738_v18  ;;  %v1346_v59 = vmul.f32 %v1344_v4, %v2756_v38 }
 0x276   : > { %v1198_v47 = vadd.f32 %v1193_v62, %v1185_v28 }
 0x277   : > { %v1351_v32 = vstv %s1768_s3 }
 0x278   : > { %v1213_v50 = vadd.f32 %v1208_v49, %v1198_v47  ;;  %v1352_v34 = vmul.f32 %v1351_v32, %v2741_v36  ;;  %v1353_v28 = vmul.f32 %v1351_v32, %v2752_v54 }
 0x279   : > { %1505 = vrot.lane.b32.xlu1 %v1500_v58, %s1994_s8  ;;  %1475 = vrot.lane.b32.xlu2 %v1471_v6, %s1993_s7 }
 0x27a   : > { %1518 = vrot.lane.b32.xlu0 %v1513_v48, %s1994_s8 }
 0x27b   : > { %v1195_v52 = vpop.permute.xlu1 %1194  ;;  %v1223_v29 = vpop.permute.xlu2 %1222 }
 0x27c   : > { %v1199_v22 = vadd.f32 %v1195_v52, %v1186_v39  ;;  %v1210_v0 = vpop.permute.xlu0 %1209 }
 0x27e   : > { %v1214_v53 = vadd.f32 %v1210_v0, %v1199_v22 }
 0x280   : > { %v1227_v13 = vadd.f32 %v1223_v29, %v1214_v53 }
 0x281   : > { %1490 = vrot.lane.b32.xlu2 %v1485_v44, %s1993_s7  ;;  %s1789_s7 = sshll.u32 %s2033_s13, 4  ;;  %s1578_s13 = sshll.u32 %s2125_s28, 4  ;;  %s1579_s13 = int_to_ptr.vmem [resolvable:$true] %s1578_s13 }
 0x282   : > { %s1577_s27 = scalar_lea.hbm %s2884_s2, %s1789_s7 }
 0x283   : > { %v1221_v63 = vpop.permute.xlu1 %1220  ;;  %v1249_v1 = vpop.permute.xlu2 %1248  ;;  %s1580_s6 = sshll.u32 %s1577_s27, 4  ;;  %s1581_s6 = int_to_ptr.hbm [resolvable:$true] %s1580_s6 }
 0x284   : > { %v1236_v2 = vpop.permute.xlu0 %1235  ;;  %v1226_v40 = vadd.f32 %v1221_v63, %v1213_v50  ;;  %s1926_s20 = sshra.s32 %s1581_s6, 4  ;;  %s1927_s20 = int_to_ptr.hbm [resolvable:$true] %s1926_s20 }
 0x285   : > { %s1928_s5 = scalar_lea.hbm %s1927_s20, 16  ;;  %p1933_p0 = scmp.lt.s32.totalorder %s1927_s20, %s2884_s2 }
 0x286   : > { %v1241_v15 = vadd.f32 %v1236_v2, %v1226_v40  ;;  %p1929_p4 = scmp.ne.s32.totalorder %s1927_s20, %s1928_s5  ;;  %p1934_p8 = scmp.lt.s32.totalorder %s1932_s16, %s1928_s5 }
 0x288   : > { %v1254_v11 = vadd.f32 %v1249_v1, %v1241_v15  ;;  %p1930_p6 = pnand %p1929_p4, %p2064_p11  ;;  %p1935_p5 = por %p1934_p8, %p1933_p0 }
 0x289   : > { %1516 = vrot.lane.b32.xlu2 %v1512_v8, %s1994_s8 }
 0x28a   : > { %p1931_p1 = pneg %p1930_p6 }
 0x28b   : > { %v1238_v45 = vpop.permute.xlu1 %1237  ;;  %v1266_v16 = vpop.permute.xlu2 %1265 }
 0x28c   : > { %v1251_v3 = vpop.permute.xlu0 %1250  ;;  %v1242_v10 = vadd.f32 %v1238_v45, %v1227_v13  ;;  %p1936_p9 = pnand %p1935_p5, %p1931_p1 }
 0x28e   : > { %v1255_v51 = vadd.f32 %v1251_v3, %v1242_v10 }
 0x290   : > { %v1270_v23 = vadd.f32 %v1266_v16, %v1255_v51 }
 0x293   : > { %v1264_v5 = vpop.permute.xlu1 %1263  ;;  %v1292_v57 = vpop.permute.xlu2 %1291 }
 0x294   : > { %v1277_v30 = vpop.permute.xlu0 %1276  ;;  %v1269_v17 = vadd.f32 %v1264_v5, %v1254_v11 }
 0x296   : > { %v1282_v19 = vadd.f32 %v1277_v30, %v1269_v17 }
 0x298   : > { %v1297_v41 = vadd.f32 %v1292_v57, %v1282_v19 }
 0x29b   : > { %v1279_v12 = vpop.permute.xlu1 %1278  ;;  %v1307_v35 = vpop.permute.xlu2 %1306 }
 0x29c   : > { %v1294_v33 = vpop.permute.xlu0 %1293  ;;  %v1283_v24 = vadd.f32 %v1279_v12, %v1270_v23 }
 0x29e   : > { %v1298_v27 = vadd.f32 %v1294_v33, %v1283_v24 }
 0x2a0   : > { %v1311_v55 = vadd.f32 %v1307_v35, %v1298_v27 }
 0x2a3   : > { %v1305_v31 = vpop.permute.xlu1 %1304  ;;  %v1333_v21 = vpop.permute.xlu2 %1332 }
 0x2a4   : > { %v1310_v61 = vadd.f32 %v1305_v31, %v1297_v41  ;;  %v1320_v25 = vpop.permute.xlu0 %1319 }
 0x2a6   : > { %v1325_v37 = vadd.f32 %v1320_v25, %v1310_v61 }
 0x2a8   : > { %v1338_v26 = vadd.f32 %v1333_v21, %v1325_v37 }
 0x2aa   : > { %v1347_v20 = vadd.f32 %v1345_v56, %v1338_v26 }
 0x2ab   : > { %v1322_v9 = vpop.permute.xlu1 %1321  ;;  %v1366_v14 = vpop.permute.xlu2 %1365 }
 0x2ac   : > { %v1326_v42 = vadd.f32 %v1322_v9, %v1311_v55  ;;  %v1335_v43 = vpop.permute.xlu0 %1334  ;;  %v1354_v60 = vadd.f32 %v1352_v34, %v1347_v20 }
 0x2ae   : > { %v1339_v7 = vadd.f32 %v1335_v43, %v1326_v42 }
 0x2b0   : > { %v1348_v49 = vadd.f32 %v1346_v59, %v1339_v7 }
 0x2b2   : > { %v1355_v62 = vadd.f32 %v1353_v28, %v1348_v49 }
 0x2b3   : > { %v1364_v39 = vpop.permute.xlu1 %1363  ;;  %v1392_v46 = vpop.permute.xlu2 %1391 }
 0x2b4   : > { %v1377_v47 = vpop.permute.xlu0 %1376  ;;  %v1369_v52 = vadd.f32 %v1364_v39, %v1354_v60  ;;  %v1370_v53 = vadd.f32 %v1366_v14, %v1355_v62 }
 0x2b6   : > { %v1382_v29 = vadd.f32 %v1377_v47, %v1369_v52 }
 0x2b8   : > { %v1397_v13 = vadd.f32 %v1392_v46, %v1382_v29 }
 0x2bb   : > { %v1379_v18 = vpop.permute.xlu1 %1378  ;;  %v1407_v58 = vpop.permute.xlu2 %1406 }
 0x2bc   : > { %v1394_v6 = vpop.permute.xlu0 %1393  ;;  %v1383_v44 = vadd.f32 %v1379_v18, %v1370_v53 }
 0x2be   : > { %v1398_v54 = vadd.f32 %v1394_v6, %v1383_v44 }
 0x2c0   : > { %v1411_v16 = vadd.f32 %v1407_v58, %v1398_v54 }
 0x2c3   : > { %v1405_v36 = vpop.permute.xlu1 %1404  ;;  %v1433_v48 = vpop.permute.xlu2 %1432 }
 0x2c4   : > { %v1420_v50 = vpop.permute.xlu0 %1419  ;;  %v1410_v63 = vadd.f32 %v1405_v36, %v1397_v13 }
 0x2c6   : > { %v1425_v8 = vadd.f32 %v1420_v50, %v1410_v63 }
 0x2c8   : > { %v1438_v40 = vadd.f32 %v1433_v48, %v1425_v8 }
 0x2cb   : > { %v1422_v22 = vpop.permute.xlu1 %1421  ;;  %v1450_v0 = vpop.permute.xlu2 %1449 }
 0x2cc   : > { %v1435_v38 = vpop.permute.xlu0 %1434  ;;  %v1426_v3 = vadd.f32 %v1422_v22, %v1411_v16 }
 0x2ce   : > { %v1439_v15 = vadd.f32 %v1435_v38, %v1426_v3 }
 0x2d0   : > { %v1454_v17 = vadd.f32 %v1450_v0, %v1439_v15 }
 0x2d3   : > { %v1448_v1 = vpop.permute.xlu1 %1447  ;;  %v1476_v2 = vpop.permute.xlu2 %1475 }
 0x2d4   : > { %v1461_v45 = vpop.permute.xlu0 %1460  ;;  %v1453_v5 = vadd.f32 %v1448_v1, %v1438_v40 }
 0x2d6   : > { %v1466_v11 = vadd.f32 %v1461_v45, %v1453_v5 }
 0x2d8   : > { %v1481_v35 = vadd.f32 %v1476_v2, %v1466_v11 }
 0x2db   : > { %v1463_v57 = vpop.permute.xlu1 %1462  ;;  %v1491_v10 = vpop.permute.xlu2 %1490 }
 0x2dc   : > { %v1478_v30 = vpop.permute.xlu0 %1477  ;;  %v1467_v12 = vadd.f32 %v1463_v57, %v1454_v17 }
 0x2de   : > { %v1482_v23 = vadd.f32 %v1478_v30, %v1467_v12 }
 0x2e0   : > { %v1495_v61 = vadd.f32 %v1491_v10, %v1482_v23 }
 0x2e3   : > { %v1489_v51 = vpop.permute.xlu1 %1488  ;;  %v1517_v41 = vpop.permute.xlu2 %1516 }
 0x2e4   : > { %v1494_v33 = vadd.f32 %v1489_v51, %v1481_v35  ;;  %v1504_v19 = vpop.permute.xlu0 %1503 }
 0x2e6   : > { %v1509_v24 = vadd.f32 %v1504_v19, %v1494_v33 }
 0x2e8   : > { %v1522_v31 = vadd.f32 %v1517_v41, %v1509_v24 }
 0x2ea   : > { %v1781_v21 = vmul.f32 -1.442695, %v1522_v31 }
 0x2eb   : > { %v1506_v25 = vpop.permute.xlu1 %1505 }
 0x2ec   : > { %1859 = vpow2.f32 %v1781_v21  ;;  %v1510_v4 = vadd.f32 %v1506_v25, %v1495_v61  ;;  %v1519_v27 = vpop.permute.xlu0 %1518 }
 0x2ee   : > { %v1523_v37 = vadd.f32 %v1519_v27, %v1510_v4 }
 0x2f0   : > { %v1782_v32 = vmul.f32 -1.442695, %v1523_v37 }
 0x2f2   : > { %v1860_v26 = vpop.eup %1859  ;;  %1861 = vpow2.f32 %v1782_v32 }
 0x2f3   : > { %v1530_v56 = vadd.f32 1.0, %v1860_v26 }
 0x2f5   : > { %1863 = vrcp.f32 %v1530_v56  ;;  %v1543_v42 = vand.u32 2147483648, %v1530_v56  ;;  %v1541_v60 = vand.u32 2147483647, %v1530_v56  ;;  %vm1537_vm4 = vweird.f32 %v1530_v56 }
 0x2f7   : > { %v1544_v28 = vor.u32 1.1754944e-38, %v1543_v42  ;;  %vm1542_vm7 = vcmp.eq.f32.partialorder %v1541_v60, 8.507059e+37 }
 0x2f8   : > { %v1862_v55 = vpop.eup %1861 }
 0x2f9   : > { %v1531_v34 = vadd.f32 1.0, %v1862_v55 }
 0x2fb   : > { %v1864_v20 = vpop.eup %1863  ;;  %1865 = vrcp.f32 %v1531_v34  ;;  %v1558_v46 = vand.u32 2147483648, %v1531_v34  ;;  %v1556_v58 = vand.u32 2147483647, %v1531_v34  ;;  %vm1552_vm9 = vweird.f32 %v1531_v34 }
 0x2fc   : > { %v1533_v9 = vmul.f32 %v1864_v20, %v1530_v56  ;;  %vm1538_vm3 = vweird.f32 %v1864_v20 }
 0x2fd   : > { %vm1539_vm5 = vmor %vm1537_vm4, %vm1538_vm3  ;;  %v1559_v36 = vor.u32 1.1754944e-38, %v1558_v46  ;;  %vm1557_vm11 = vcmp.eq.f32.partialorder %v1556_v58, 8.507059e+37 }
 0x2fe   : > { %v1534_v14 = vsub.f32 1.0, %v1533_v9 }
 0x300   : > { %v1535_v43 = vmul.f32 %v1864_v20, %v1534_v14 }
 0x301   : > { %v1866_v59 = vpop.eup %1865 }
 0x302   : > { %v1548_v7 = vmul.f32 %v1866_v59, %v1531_v34  ;;  %v1536_v49 = vadd.f32 %v1864_v20, %v1535_v43  ;;  %vm1553_vm8 = vweird.f32 %v1866_v59 }
 0x303   : > { %vm1554_vm10 = vmor %vm1552_vm9, %vm1553_vm8 }
 0x304   : > { %v1549_v62 = vsub.f32 1.0, %v1548_v7  ;;  %v1540_v39 = vsel %vm1539_vm5, %v1864_v20, %v1536_v49 }
 0x305   : > { %v1545_v47 = vsel %vm1542_vm7, %v1544_v28, %v1540_v39 }
 0x306   : > { %v1550_v18 = vmul.f32 %v1866_v59, %v1549_v62  ;;  %1563 = vst.msk [vmem:[%s2125_s28] sm:$0xff] %vm1562_vm6, %v1545_v47 }
 0x308   : > { %v1551_v6 = vadd.f32 %v1866_v59, %v1550_v18 }
 0x30a   : > { %v1555_v48 = vsel %vm1554_vm10, %v1866_v59, %v1551_v6 }
 0x30b   : > { %v1560_v50 = vsel %vm1557_vm11, %v1559_v36, %v1555_v48 }
 0x30c   : > { %1564 = vst.msk [vmem:[%s2125_s28 + $0x8] sm:$0xff] %vm1562_vm6, %v1560_v50 }
 0x30d   : > { %1939 = shalt.err (!%p1936_p9)
}
 0x30e   : > { %s1995_s4 = smov 128   ;;  %s1996_s28 = smov 8  }
 0x30f   : > { %1796 = dma.vmem_to_hbm [thread:$0]  (%p2064_p11), %s1579_s13, 256, %s1581_s6, %s1566_s23, %s1995_s4, %s1995_s4, %s1996_s28  }
 0x310 PF: > { %s1595_s30 = sand.u32 1, %s1970_s9   ;;  %p2892_p10 = scmp.ge.s32.totalorder %s1982_s12, 2 }
 0x311   : > { %s1596_s26 = scalar_lea.sflag [#allocation6], %s1595_s30 }
 0x312   : > { %p1807_p2 = pnand %p2892_p10, %p2068_p12 }
 0x314   : > { %p1808_p7 = pneg %p1807_p2 }
 0x316   : > { %1965 = dma.done.wait (%p1808_p7), %s1596_s26, 256  }
 0x317   : > { %1967 = vsyncadd (%p1808_p7), %s1596_s26, 4294967040  ;;  %p16_p3 = scmp.ge.s32.totalorder %s2037_s15, 4   ;;  %s2893_s9 = smov %s1974_s10 }
 0x318   : > { %s2894_s10 = smov %s1978_s11  ;;  %s2895_s11 = smov %s2049_s18 }
 0x319   : > { %s2896_s12 = smov %s2037_s15  ;;  %18 = sbr.rel (!%p16_p3) target bundleno = 6 (0x6), region = 85 }
 0x31e   :  { %1602 = vsyncpa [#allocation5], 1 }
 0x31f   :  { %1604 = vsyncpa [#allocation5 + $0x1], 1 }
 0x320   :  { %1605 = vsyncpa [#allocation6], 1 }
 0x321   :  { %1607 = vsyncpa [#allocation6 + $0x1], 1 }
 0x322   :  { %1608 = vsyncpa [#allocation7], 1 }
 0x323   :  { %1610 = vsyncpa [#allocation7 + $0x1], 1 }

</bundles_post_ra>
